<compile_context>
chip_gen: v7x
topology: tpu7x:2x2x1
jax: 0.10.0
libtpu: 0.0.40
codegen_flags: <defaults>
</compile_context>

<pallas_src>
import functools

import jax
import jax.numpy as jnp
from jax.experimental import pallas as pl
from jax.experimental.pallas import tpu as pltpu


def _conv_bn_relu_kernel(x_ref, w_ref, shift_ref, o_ref, *,
                         kh, kw, stride, toh, ow, c, oc, ocp):
    # x_ref:     (1, HPP, WP, C)    bf16 zero-padded NHWC image (resident per batch elem)
    # w_ref:     (KH*KW, C, OCp)    bf16 conv weight with BN scale folded in
    # shift_ref: (1, OCp)           f32 folded BN shift
    # o_ref:     (1, TOH, OW, OC)   output row tile (true OC width in HBM)
    t = pl.program_id(1)
    h0 = pl.multiple_of(t * (toh * stride), toh * stride)   # first input row of this tile
    m = toh * ow

    # Accumulator pre-loaded with the BN shift: one broadcast per grid step.
    acc = jnp.broadcast_to(shift_ref[...], (m, ocp)).astype(jnp.float32)

    # One (toh*ow, C) x (C, OCp) matmul per kernel tap; static unroll over kh*kw taps.
    for i in range(kh):
        for j in range(kw):
            if stride == 1:
                slab = x_ref[0, pl.ds(h0 + i, toh), pl.ds(j, ow), :]            # (TOH, OW, C)
            else:
                slab = x_ref[0, pl.ds(h0 + i, toh, stride),
                             pl.ds(j, ow, stride), :]                            # strided rows/cols
            lhs = slab.reshape(m, c)                                             # M = TOH*OW
            acc = acc + jnp.dot(lhs, w_ref[i * kw + j],
                                preferred_element_type=jnp.float32)

    y = jnp.maximum(acc, 0.0)                                # shift already in acc; ReLU
    o_ref[...] = y[:, :oc].reshape(1, toh, ow, oc).astype(o_ref.dtype)


def _pick_toh(oh, ow, ocp, out_itemsize):
    """Output rows per grid step: enough that MXU M = toh*ow >= ~256, bounded by a
    small VMEM budget for the f32 accumulator + (double-buffered) output tile."""
    m_target = 256
    budget = 4 << 20
    per_row = max(ow, 8) * ocp * (4 + 2 * out_itemsize)
    max_by_vmem = max(1, budget // per_row)
    return max(1, min(oh, max(1, -(-m_target // ow)), max_by_vmem))


def _round_up(v, m):
    return ((v + m - 1) // m) * m


@functools.partial(jax.jit, static_argnames=("stride", "padding", "eps"))
def conv2d_bn_relu(x_nchw, weight, bias, gamma, beta, running_mean, running_var,
                   *, stride=1, padding=1, eps=1e-3):
    """Matches PyTorch Conv2d -> BatchNorm2d(eval, eps) -> ReLU.

    x_nchw: (N, C, H, W); weight: (OC, C, KH, KW) (PyTorch layouts).
    Returns (N, OC, OH, OW).
    """
    n, c, h, w = x_nchw.shape
    oc, _, kh, kw = weight.shape
    oh = (h + 2 * padding - kh) // stride + 1
    ow = (w + 2 * padding - kw) // stride + 1
    hp, wp = h + 2 * padding, w + 2 * padding

    ocp = _round_up(oc, 128)                                 # lane-dense MXU N dimension
    out_itemsize = jnp.dtype(x_nchw.dtype).itemsize

    # Row-tile size and output-row padding (handles oh not divisible by toh).
    toh = _pick_toh(oh, ow, ocp, out_itemsize)
    n_t = -(-oh // toh)                                      # cdiv
    oh_pad = n_t * toh
    hp_need = (oh_pad - 1) * stride + kh                     # deepest input row touched
    extra_h = max(0, hp_need - hp)
    hpp = hp + extra_h

    # ---- glue: layout conversion + BN fold (plain JAX, ~1x input traffic) ----
    x_nhwc = jnp.transpose(x_nchw, (0, 2, 3, 1)).astype(jnp.bfloat16)
    x_pad = jnp.pad(x_nhwc, ((0, 0), (padding, padding + extra_h),
                             (padding, padding), (0, 0)))

    scale = (gamma / jnp.sqrt(running_var + eps)).astype(jnp.float32)       # (OC,)
    shift = (beta + (bias - running_mean) * scale).astype(jnp.float32)      # (OC,)

    # (OC, C, KH, KW) -> (KH, KW, C, OC); fold BN scale into columns; pad OC; bf16.
    w_khwc = jnp.transpose(weight, (2, 3, 1, 0)).astype(jnp.float32) * scale
    w_mat = w_khwc.reshape(kh * kw, c, oc)
    w_mat = jnp.pad(w_mat, ((0, 0), (0, 0), (0, ocp - oc))).astype(jnp.bfloat16)
    shift_p = jnp.pad(shift, (0, ocp - oc)).reshape(1, ocp)

    kernel = functools.partial(_conv_bn_relu_kernel, kh=kh, kw=kw, stride=stride,
                               toh=toh, ow=ow, c=c, oc=oc, ocp=ocp)

    # Explicit VMEM budget: lane/sublane-padded block bytes x 2 buffers + headroom.
    x_bytes = hpp * _round_up(wp, 16) * _round_up(c, 128) * 2
    w_bytes = kh * kw * _round_up(c, 16) * ocp * 2
    s_bytes = 8 * ocp * 4
    o_bytes = toh * _round_up(ow, 8) * _round_up(oc, 128) * out_itemsize
    est = 2 * (x_bytes + w_bytes + s_bytes + o_bytes)
    vmem_limit = int(min(max(est + (4 << 20), 16 << 20), 64 << 20))

    out = pl.pallas_call(
        kernel,
        out_shape=jax.ShapeDtypeStruct((n, oh_pad, ow, oc), x_nchw.dtype),
        grid=(n, n_t),
        in_specs=[
            # Whole padded image; block index constant over the row-tile axis, so it is
            # fetched once per image and stays resident in VMEM.
            pl.BlockSpec((1, hpp, wp, c), lambda b, t: (b, 0, 0, 0)),
            pl.BlockSpec((kh * kw, c, ocp), lambda b, t: (0, 0, 0)),
            pl.BlockSpec((1, ocp), lambda b, t: (0, 0)),
        ],
        out_specs=pl.BlockSpec((1, toh, ow, oc), lambda b, t: (b, t, 0, 0)),
        compiler_params=pltpu.CompilerParams(
            dimension_semantics=("parallel", "arbitrary"),
            vmem_limit_bytes=vmem_limit),
    )(x_pad, w_mat, shift_p)

    out = out[:, :oh]                                        # drop padded output rows
    return jnp.transpose(out, (0, 3, 1, 2))                  # NHWC -> NCHW


if __name__ == "__main__":
    # Small deterministic setup: N=2, C_in=4, H=W=16, C_out=8, 3x3, pad=1, stride=1.
    key = jax.random.PRNGKey(0)
    kx, kw_, kb, kg, kbe, km, kv = jax.random.split(key, 7)

    N, C_IN, H, W = 2, 4, 16, 16
    C_OUT, KH, KW = 8, 3, 3
    STRIDE, PAD = 1, 1

    x = jax.random.normal(kx, (N, C_IN, H, W), dtype=jnp.float32)

    # Deterministic parameter init (synthetic; shapes match nn.Conv2d / nn.BatchNorm2d).
    fan_in = C_IN * KH * KW
    bound = 1.0 / (fan_in ** 0.5)
    weight = jax.random.uniform(kw_, (C_OUT, C_IN, KH, KW), jnp.float32, -bound, bound)
    bias = jax.random.uniform(kb, (C_OUT,), jnp.float32, -bound, bound)
    gamma = 1.0 + 0.1 * jax.random.normal(kg, (C_OUT,), jnp.float32)
    beta = 0.1 * jax.random.normal(kbe, (C_OUT,), jnp.float32)
    running_mean = 0.1 * jax.random.normal(km, (C_OUT,), jnp.float32)
    running_var = 0.5 + jnp.abs(jax.random.normal(kv, (C_OUT,), jnp.float32))

    out = conv2d_bn_relu(x, weight, bias, gamma, beta, running_mean, running_var,
                         stride=STRIDE, padding=PAD, eps=1e-3)
    jax.block_until_ready(out)
    assert out.shape == (N, C_OUT, H, W), out.shape

    # Pure-JAX f32 reference (conv + eval-mode BN + ReLU); loose tol for bf16 MXU operands.
    conv = jax.lax.conv_general_dilated(
        x, weight, window_strides=(STRIDE, STRIDE),
        padding=((PAD, PAD), (PAD, PAD)),
        dimension_numbers=("NCHW", "OIHW", "NCHW"))
    conv = conv + bias.reshape(1, -1, 1, 1)
    inv = (gamma / jnp.sqrt(running_var + 1e-3)).reshape(1, -1, 1, 1)
    ref = (conv - running_mean.reshape(1, -1, 1, 1)) * inv + beta.reshape(1, -1, 1, 1)
    ref = jnp.maximum(ref, 0.0)
    max_err = float(jnp.max(jnp.abs(out - ref)))
    assert max_err < 5e-2, f"max abs err {max_err}"

    print("KERNEL_OK")
</pallas_src>

<mosaic_0001>
module attributes {stable_mosaic.version = 11 : i64} {
  func.func @_conv_bn_relu_kernel(%arg0: i32, %arg1: i32, %arg2: memref<1x18x18x4xbf16, #tpu.memory_space<vmem>>, %arg3: memref<9x4x128xbf16, #tpu.memory_space<vmem>>, %arg4: memref<1x128xf32, #tpu.memory_space<vmem>>, %arg5: memref<1x16x16x8xf32, #tpu.memory_space<vmem>>) attributes {dimension_semantics = [#tpu.dimension_semantics<parallel>, #tpu.dimension_semantics<arbitrary>], iteration_bounds = array<i64: 2, 1>, scalar_prefetch = 0 : i64, scratch_operands = 0 : i64, tpu.core_type = #tpu.core_type<tc>, window_params = [{transform_indices = @transform_0, window_bounds = array<i64: 1, 18, 18, 4>}, {pipeline_mode = #tpu.pipeline_mode<synchronous>, transform_indices = @transform_1, window_bounds = array<i64: 9, 4, 128>}, {pipeline_mode = #tpu.pipeline_mode<synchronous>, transform_indices = @transform_2, window_bounds = array<i64: 1, 128>}, {transform_indices = @transform_3, window_bounds = array<i64: 1, 16, 16, 8>}]} {
    %c16_i32 = arith.constant 16 : i32
    %0 = arith.muli %arg1, %c16_i32 : i32
    %1 = tpu.assume_multiple %0, 16 : i32
    %c0 = arith.constant 0 : index
    %c0_0 = arith.constant 0 : index
    %2 = vector.load %arg4[%c0, %c0_0] : memref<1x128xf32, #tpu.memory_space<vmem>>, vector<1x128xf32>
    %3 = vector.shape_cast %2 : vector<1x128xf32> to vector<1x128xf32>
    %4 = vector.broadcast %3 : vector<1x128xf32> to vector<256x128xf32>
    %c0_i32 = arith.constant 0 : i32
    %5 = arith.addi %1, %c0_i32 : i32
    %c0_1 = arith.constant 0 : index
    %6 = arith.index_cast %5 : i32 to index
    %c0_2 = arith.constant 0 : index
    %c0_3 = arith.constant 0 : index
    %7 = vector.load %arg2[%c0_1, %6, %c0_2, %c0_3] : memref<1x18x18x4xbf16, #tpu.memory_space<vmem>>, vector<1x16x16x4xbf16>
    %8 = vector.shape_cast %7 : vector<1x16x16x4xbf16> to vector<16x16x4xbf16>
    %9 = vector.shape_cast %8 : vector<16x16x4xbf16> to vector<256x4xbf16>
    %c0_4 = arith.constant 0 : index
    %c0_5 = arith.constant 0 : index
    %c0_6 = arith.constant 0 : index
    %10 = vector.load %arg3[%c0_4, %c0_5, %c0_6] : memref<9x4x128xbf16, #tpu.memory_space<vmem>>, vector<1x4x128xbf16>
    %11 = vector.shape_cast %10 : vector<1x4x128xbf16> to vector<4x128xbf16>
    %cst = arith.constant dense<0.000000e+00> : vector<256x128xf32>
    %12 = tpu.matmul %9, %11, %cst {dimension_numbers = #tpu.dot_dimension_numbers<[1], [0], [0], [1], [0, 0, 1, 1], [], []>} : vector<256x4xbf16>, vector<4x128xbf16>, vector<256x128xf32> -> vector<256x128xf32>
    %13 = arith.addf %4, %12 : vector<256x128xf32>
    %c0_i32_7 = arith.constant 0 : i32
    %14 = arith.addi %1, %c0_i32_7 : i32
    %c0_8 = arith.constant 0 : index
    %15 = arith.index_cast %14 : i32 to index
    %c1 = arith.constant 1 : index
    %c0_9 = arith.constant 0 : index
    %16 = vector.load %arg2[%c0_8, %15, %c1, %c0_9] : memref<1x18x18x4xbf16, #tpu.memory_space<vmem>>, vector<1x16x16x4xbf16>
    %17 = vector.shape_cast %16 : vector<1x16x16x4xbf16> to vector<16x16x4xbf16>
    %18 = vector.shape_cast %17 : vector<16x16x4xbf16> to vector<256x4xbf16>
    %c1_10 = arith.constant 1 : index
    %c0_11 = arith.constant 0 : index
    %c0_12 = arith.constant 0 : index
    %19 = vector.load %arg3[%c1_10, %c0_11, %c0_12] : memref<9x4x128xbf16, #tpu.memory_space<vmem>>, vector<1x4x128xbf16>
    %20 = vector.shape_cast %19 : vector<1x4x128xbf16> to vector<4x128xbf16>
    %cst_13 = arith.constant dense<0.000000e+00> : vector<256x128xf32>
    %21 = tpu.matmul %18, %20, %cst_13 {dimension_numbers = #tpu.dot_dimension_numbers<[1], [0], [0], [1], [0, 0, 1, 1], [], []>} : vector<256x4xbf16>, vector<4x128xbf16>, vector<256x128xf32> -> vector<256x128xf32>
    %22 = arith.addf %13, %21 : vector<256x128xf32>
    %c0_i32_14 = arith.constant 0 : i32
    %23 = arith.addi %1, %c0_i32_14 : i32
    %c0_15 = arith.constant 0 : index
    %24 = arith.index_cast %23 : i32 to index
    %c2 = arith.constant 2 : index
    %c0_16 = arith.constant 0 : index
    %25 = vector.load %arg2[%c0_15, %24, %c2, %c0_16] : memref<1x18x18x4xbf16, #tpu.memory_space<vmem>>, vector<1x16x16x4xbf16>
    %26 = vector.shape_cast %25 : vector<1x16x16x4xbf16> to vector<16x16x4xbf16>
    %27 = vector.shape_cast %26 : vector<16x16x4xbf16> to vector<256x4xbf16>
    %c2_17 = arith.constant 2 : index
    %c0_18 = arith.constant 0 : index
    %c0_19 = arith.constant 0 : index
    %28 = vector.load %arg3[%c2_17, %c0_18, %c0_19] : memref<9x4x128xbf16, #tpu.memory_space<vmem>>, vector<1x4x128xbf16>
    %29 = vector.shape_cast %28 : vector<1x4x128xbf16> to vector<4x128xbf16>
    %cst_20 = arith.constant dense<0.000000e+00> : vector<256x128xf32>
    %30 = tpu.matmul %27, %29, %cst_20 {dimension_numbers = #tpu.dot_dimension_numbers<[1], [0], [0], [1], [0, 0, 1, 1], [], []>} : vector<256x4xbf16>, vector<4x128xbf16>, vector<256x128xf32> -> vector<256x128xf32>
    %31 = arith.addf %22, %30 : vector<256x128xf32>
    %c1_i32 = arith.constant 1 : i32
    %32 = arith.addi %1, %c1_i32 : i32
    %c0_21 = arith.constant 0 : index
    %33 = arith.index_cast %32 : i32 to index
    %c0_22 = arith.constant 0 : index
    %c0_23 = arith.constant 0 : index
    %34 = vector.load %arg2[%c0_21, %33, %c0_22, %c0_23] : memref<1x18x18x4xbf16, #tpu.memory_space<vmem>>, vector<1x16x16x4xbf16>
    %35 = vector.shape_cast %34 : vector<1x16x16x4xbf16> to vector<16x16x4xbf16>
    %36 = vector.shape_cast %35 : vector<16x16x4xbf16> to vector<256x4xbf16>
    %c3 = arith.constant 3 : index
    %c0_24 = arith.constant 0 : index
    %c0_25 = arith.constant 0 : index
    %37 = vector.load %arg3[%c3, %c0_24, %c0_25] : memref<9x4x128xbf16, #tpu.memory_space<vmem>>, vector<1x4x128xbf16>
    %38 = vector.shape_cast %37 : vector<1x4x128xbf16> to vector<4x128xbf16>
    %cst_26 = arith.constant dense<0.000000e+00> : vector<256x128xf32>
    %39 = tpu.matmul %36, %38, %cst_26 {dimension_numbers = #tpu.dot_dimension_numbers<[1], [0], [0], [1], [0, 0, 1, 1], [], []>} : vector<256x4xbf16>, vector<4x128xbf16>, vector<256x128xf32> -> vector<256x128xf32>
    %40 = arith.addf %31, %39 : vector<256x128xf32>
    %c1_i32_27 = arith.constant 1 : i32
    %41 = arith.addi %1, %c1_i32_27 : i32
    %c0_28 = arith.constant 0 : index
    %42 = arith.index_cast %41 : i32 to index
    %c1_29 = arith.constant 1 : index
    %c0_30 = arith.constant 0 : index
    %43 = vector.load %arg2[%c0_28, %42, %c1_29, %c0_30] : memref<1x18x18x4xbf16, #tpu.memory_space<vmem>>, vector<1x16x16x4xbf16>
    %44 = vector.shape_cast %43 : vector<1x16x16x4xbf16> to vector<16x16x4xbf16>
    %45 = vector.shape_cast %44 : vector<16x16x4xbf16> to vector<256x4xbf16>
    %c4 = arith.constant 4 : index
    %c0_31 = arith.constant 0 : index
    %c0_32 = arith.constant 0 : index
    %46 = vector.load %arg3[%c4, %c0_31, %c0_32] : memref<9x4x128xbf16, #tpu.memory_space<vmem>>, vector<1x4x128xbf16>
    %47 = vector.shape_cast %46 : vector<1x4x128xbf16> to vector<4x128xbf16>
    %cst_33 = arith.constant dense<0.000000e+00> : vector<256x128xf32>
    %48 = tpu.matmul %45, %47, %cst_33 {dimension_numbers = #tpu.dot_dimension_numbers<[1], [0], [0], [1], [0, 0, 1, 1], [], []>} : vector<256x4xbf16>, vector<4x128xbf16>, vector<256x128xf32> -> vector<256x128xf32>
    %49 = arith.addf %40, %48 : vector<256x128xf32>
    %c1_i32_34 = arith.constant 1 : i32
    %50 = arith.addi %1, %c1_i32_34 : i32
    %c0_35 = arith.constant 0 : index
    %51 = arith.index_cast %50 : i32 to index
    %c2_36 = arith.constant 2 : index
    %c0_37 = arith.constant 0 : index
    %52 = vector.load %arg2[%c0_35, %51, %c2_36, %c0_37] : memref<1x18x18x4xbf16, #tpu.memory_space<vmem>>, vector<1x16x16x4xbf16>
    %53 = vector.shape_cast %52 : vector<1x16x16x4xbf16> to vector<16x16x4xbf16>
    %54 = vector.shape_cast %53 : vector<16x16x4xbf16> to vector<256x4xbf16>
    %c5 = arith.constant 5 : index
    %c0_38 = arith.constant 0 : index
    %c0_39 = arith.constant 0 : index
    %55 = vector.load %arg3[%c5, %c0_38, %c0_39] : memref<9x4x128xbf16, #tpu.memory_space<vmem>>, vector<1x4x128xbf16>
    %56 = vector.shape_cast %55 : vector<1x4x128xbf16> to vector<4x128xbf16>
    %cst_40 = arith.constant dense<0.000000e+00> : vector<256x128xf32>
    %57 = tpu.matmul %54, %56, %cst_40 {dimension_numbers = #tpu.dot_dimension_numbers<[1], [0], [0], [1], [0, 0, 1, 1], [], []>} : vector<256x4xbf16>, vector<4x128xbf16>, vector<256x128xf32> -> vector<256x128xf32>
    %58 = arith.addf %49, %57 : vector<256x128xf32>
    %c2_i32 = arith.constant 2 : i32
    %59 = arith.addi %1, %c2_i32 : i32
    %c0_41 = arith.constant 0 : index
    %60 = arith.index_cast %59 : i32 to index
    %c0_42 = arith.constant 0 : index
    %c0_43 = arith.constant 0 : index
    %61 = vector.load %arg2[%c0_41, %60, %c0_42, %c0_43] : memref<1x18x18x4xbf16, #tpu.memory_space<vmem>>, vector<1x16x16x4xbf16>
    %62 = vector.shape_cast %61 : vector<1x16x16x4xbf16> to vector<16x16x4xbf16>
    %63 = vector.shape_cast %62 : vector<16x16x4xbf16> to vector<256x4xbf16>
    %c6 = arith.constant 6 : index
    %c0_44 = arith.constant 0 : index
    %c0_45 = arith.constant 0 : index
    %64 = vector.load %arg3[%c6, %c0_44, %c0_45] : memref<9x4x128xbf16, #tpu.memory_space<vmem>>, vector<1x4x128xbf16>
    %65 = vector.shape_cast %64 : vector<1x4x128xbf16> to vector<4x128xbf16>
    %cst_46 = arith.constant dense<0.000000e+00> : vector<256x128xf32>
    %66 = tpu.matmul %63, %65, %cst_46 {dimension_numbers = #tpu.dot_dimension_numbers<[1], [0], [0], [1], [0, 0, 1, 1], [], []>} : vector<256x4xbf16>, vector<4x128xbf16>, vector<256x128xf32> -> vector<256x128xf32>
    %67 = arith.addf %58, %66 : vector<256x128xf32>
    %c2_i32_47 = arith.constant 2 : i32
    %68 = arith.addi %1, %c2_i32_47 : i32
    %c0_48 = arith.constant 0 : index
    %69 = arith.index_cast %68 : i32 to index
    %c1_49 = arith.constant 1 : index
    %c0_50 = arith.constant 0 : index
    %70 = vector.load %arg2[%c0_48, %69, %c1_49, %c0_50] : memref<1x18x18x4xbf16, #tpu.memory_space<vmem>>, vector<1x16x16x4xbf16>
    %71 = vector.shape_cast %70 : vector<1x16x16x4xbf16> to vector<16x16x4xbf16>
    %72 = vector.shape_cast %71 : vector<16x16x4xbf16> to vector<256x4xbf16>
    %c7 = arith.constant 7 : index
    %c0_51 = arith.constant 0 : index
    %c0_52 = arith.constant 0 : index
    %73 = vector.load %arg3[%c7, %c0_51, %c0_52] : memref<9x4x128xbf16, #tpu.memory_space<vmem>>, vector<1x4x128xbf16>
    %74 = vector.shape_cast %73 : vector<1x4x128xbf16> to vector<4x128xbf16>
    %cst_53 = arith.constant dense<0.000000e+00> : vector<256x128xf32>
    %75 = tpu.matmul %72, %74, %cst_53 {dimension_numbers = #tpu.dot_dimension_numbers<[1], [0], [0], [1], [0, 0, 1, 1], [], []>} : vector<256x4xbf16>, vector<4x128xbf16>, vector<256x128xf32> -> vector<256x128xf32>
    %76 = arith.addf %67, %75 : vector<256x128xf32>
    %c2_i32_54 = arith.constant 2 : i32
    %77 = arith.addi %1, %c2_i32_54 : i32
    %c0_55 = arith.constant 0 : index
    %78 = arith.index_cast %77 : i32 to index
    %c2_56 = arith.constant 2 : index
    %c0_57 = arith.constant 0 : index
    %79 = vector.load %arg2[%c0_55, %78, %c2_56, %c0_57] : memref<1x18x18x4xbf16, #tpu.memory_space<vmem>>, vector<1x16x16x4xbf16>
    %80 = vector.shape_cast %79 : vector<1x16x16x4xbf16> to vector<16x16x4xbf16>
    %81 = vector.shape_cast %80 : vector<16x16x4xbf16> to vector<256x4xbf16>
    %c8 = arith.constant 8 : index
    %c0_58 = arith.constant 0 : index
    %c0_59 = arith.constant 0 : index
    %82 = vector.load %arg3[%c8, %c0_58, %c0_59] : memref<9x4x128xbf16, #tpu.memory_space<vmem>>, vector<1x4x128xbf16>
    %83 = vector.shape_cast %82 : vector<1x4x128xbf16> to vector<4x128xbf16>
    %cst_60 = arith.constant dense<0.000000e+00> : vector<256x128xf32>
    %84 = tpu.matmul %81, %83, %cst_60 {dimension_numbers = #tpu.dot_dimension_numbers<[1], [0], [0], [1], [0, 0, 1, 1], [], []>} : vector<256x4xbf16>, vector<4x128xbf16>, vector<256x128xf32> -> vector<256x128xf32>
    %85 = arith.addf %76, %84 : vector<256x128xf32>
    %cst_61 = arith.constant 0.000000e+00 : f32
    %86 = vector.broadcast %cst_61 : f32 to vector<256x128xf32>
    %87 = arith.maximumf %85, %86 : vector<256x128xf32>
    %88 = vector.extract_strided_slice %87 {offsets = [0, 0], sizes = [256, 8], strides = [1, 1]} : vector<256x128xf32> to vector<256x8xf32>
    %89 = vector.shape_cast %88 : vector<256x8xf32> to vector<1x16x16x8xf32>
    %c0_62 = arith.constant 0 : index
    %c0_63 = arith.constant 0 : index
    %c0_64 = arith.constant 0 : index
    %c0_65 = arith.constant 0 : index
    %90 = vector.load %arg5[%c0_62, %c0_63, %c0_64, %c0_65] : memref<1x16x16x8xf32, #tpu.memory_space<vmem>>, vector<1x16x16x8xf32>
    tpu.vector_store %arg5[%c0_62, %c0_63, %c0_64, %c0_65], %89 {strides = array<i32>} : memref<1x16x16x8xf32, #tpu.memory_space<vmem>>, vector<1x16x16x8xf32>,
    return
  }
  func.func @transform_0(%arg0: i32, %arg1: i32) -> (i32, i32, i32, i32) {
    %c0_i32 = arith.constant 0 : i32
    %c0_i32_0 = arith.constant 0 : i32
    %c0_i32_1 = arith.constant 0 : i32
    %c0_i32_2 = arith.constant 0 : i32
    return %arg0, %c0_i32, %c0_i32_0, %c0_i32_1 : i32, i32, i32, i32
  }
  func.func @transform_1(%arg0: i32, %arg1: i32) -> (i32, i32, i32) {
    %c0_i32 = arith.constant 0 : i32
    %c0_i32_0 = arith.constant 0 : i32
    %c0_i32_1 = arith.constant 0 : i32
    %c0_i32_2 = arith.constant 0 : i32
    return %c0_i32, %c0_i32_0, %c0_i32_1 : i32, i32, i32
  }
  func.func @transform_2(%arg0: i32, %arg1: i32) -> (i32, i32) {
    %c0_i32 = arith.constant 0 : i32
    %c0_i32_0 = arith.constant 0 : i32
    %c0_i32_1 = arith.constant 0 : i32
    return %c0_i32, %c0_i32_0 : i32, i32
  }
  func.func @transform_3(%arg0: i32, %arg1: i32) -> (i32, i32, i32, i32) {
    %c0_i32 = arith.constant 0 : i32
    %c0_i32_0 = arith.constant 0 : i32
    %c0_i32_1 = arith.constant 0 : i32
    return %arg0, %arg1, %c0_i32, %c0_i32_0 : i32, i32, i32, i32
  }
}

</mosaic_0001>

<bundles_post_ra>
// kernel: conv2d_bn_relu.1
= control target key start
LH: loop header
LB: loop body
LE: loop exit
PB: predicated region body
PF: predicated region fallthrough
CT: control target
= control target key end

     0   :  { %s6487_s12 = smov 0   ;;  %s6489_s13 = smov 0   ;;  %s8199_s0 = inlined_call_operand.vmem [shape: bf16[2,18,18,4], index: 0, kind: input, shape index: {}]   ;;  %s8200_s1 = inlined_call_operand.vmem [shape: bf16[9,4,128], index: 1, kind: input, shape index: {}]   ;;  %s8201_s2 = inlined_call_operand.vmem [shape: f32[1,128], index: 2, kind: input, shape index: {}]   ;;  %s8202_s3 = inlined_call_operand.vmem [shape: f32[2,16,16,8], index: 3, kind: output, shape index: {}]  }
   0x1   :  { %s6491_s14 = smov 0  }
   0x2 LB: > { %s25_s15 = sadd.s32 1, %s6461_s13  ;;  %p5051_p0 = scmp.ge.s32.totalorder %s6465_s14, 1  ;;  %s6465_s14 = sphi %s6491_s14, %s13_s14   ;;  %s6461_s13 = sphi %s6489_s13, %s8210_s13   ;;  %s6457_s12 = sphi %s6487_s12, %s8209_s12  }
   0x3   : > { %p27_p1 = scmp.ge.s32.totalorder %s25_s15, 2  ;;  %p151_p2 = scmp.lt.s32.totalorder %s6465_s14, 3 }
   0x5   : > { %s8212_s15 = smov (%p27_p1, %s25_s15), 0  ;;  %p152_p3 = pnand %p5051_p0, %p151_p2 }
   0x6   : > { %v240_v0 = vld [vmem:[%s8200_s1] sm:$0x3] (!%p152_p3)  ;;  %vm370_vm0 = vcmask (!%p152_p3), 1041408   ;;  %p180_p4 = scmp.lt.s32.totalorder (!%p152_p3), %s6457_s12, 1  ;;  %v5283_v2 = vld [vmem:[%s8200_s1 + $0x8] sm:$0x3] (!%p152_p3) }
   0x7   : > { %155 = sbr.rel (%p152_p3) target bundleno = 541 (0x21d), region = 32  ;;  %6344 = vmatprep.subr.msk.bf16.mxu1 (!%p152_p3), %vm370_vm0, %v240_v0  ;;  %v372_v1 = vsel (!%p152_p3), %vm370_vm0, %v240_v0, 0  ;;  %v5088_v3 = vld [vmem:[%s8200_s1 + $0x2] sm:$0x3] (!%p152_p3)  ;;  %6348 = vmatprep.subr.msk.bf16.mxu0 (!%p152_p3), %vm370_vm0, %v5283_v2  ;;  %v6520_v4 = vsel (!%p152_p3), %vm370_vm0, %v5283_v2, 0  ;;  %vm321_vm1 = vcmask (!%p152_p3), 31744  }
   0x8   : > { %5749 = vmatpush3.bf16.msra.mxu1 (!%p152_p3), %v372_v1  ;;  %5885 = vmatpush3.bf16.msra.mxu0 (!%p152_p3), %v6520_v4  ;;  %v5348_v5 = vld [vmem:[%s8200_s1 + $0xa] sm:$0x3] (!%p152_p3)  ;;  %vm615_vm2 = vsmask.f32 (!%p152_p3), 3328  ;;  %vm616_vm3 = vsmask.f32 (!%p152_p3), 7440 }
   0x9   : > { %6345 = vmatprep.subr.msk.bf16.mxu1 (!%p152_p3), %vm370_vm0, %v5088_v3  ;;  %6350 = vmatprep.subr.msk.bf16.mxu0 (!%p152_p3), %vm370_vm0, %v5348_v5  ;;  %v6537_v6 = vld [vmem:[%s8200_s1 + $0xc] sm:$0x3] (!%p152_p3)  ;;  %v5137_v8 = vld [vmem:[%s8200_s1 + $0x4] sm:$0x3] (!%p152_p3)  ;;  %v1101_v10 = vsel (!%p152_p3), %vm370_vm0, %v5088_v3, 0  ;;  %v6549_v12 = vsel (!%p152_p3), %vm370_vm0, %v5348_v5, 0  ;;  %vm6589_vm4 = vmor (!%p152_p3), %vm615_vm2, %vm616_vm3 }
   0xa   : > { %v6553_v13 = vsel (!%p152_p3), %vm370_vm0, %v6537_v6, 0  ;;  %v6570_v22 = vld [vmem:[%s8200_s1 + $0xe] sm:$0x3] (!%p152_p3)  ;;  %v6578_v27 = vsel (!%p152_p3), %vm370_vm0, %v5137_v8, 0  ;;  %vm1360_vm5 = vcmask (!%p152_p3), 1042432   ;;  %vm1361_vm6 = vcmask (!%p152_p3), 1046532  }
   0xb   : > { %v6596_v46 = vsel (!%p152_p3), %vm370_vm0, %v6570_v22, 0  ;;  %vm6716_vm7 = vmor (!%p152_p3), %vm1360_vm5, %vm1361_vm6  ;;  %vm4917_vm8 = vcmask (!%p152_p3), 64512  }
   0xe   : > { %s8214_s12 = smov (!%p180_p4, %s6457_s12), 1 }
   0xf   : > { %s6354_s24 = smul.u32 216, %s8214_s12  ;;  %s5594_s19 = sshll.u32 %s8214_s12, 8 }
  0x10   : > { %s8092_s22 = scalar_lea.vmem %s8202_s3, %s5594_s19 }
  0x11   : > { %s6532_s27 = scalar_lea.vmem %s8199_s0, %s6354_s24 }
  0x12   : > { %v6379_v7 = vld [vmem:[%s6532_s27] sm:$0xff]   ;;  %v6380_v9 = vld [vmem:[%s6532_s27 + $0xc] sm:$0xff]   ;;  %v6381_v11 = vld [vmem:[%s6532_s27 + $0x18] sm:$0xff]  }
  0x13   : > { %5750 = vmatprep.mubr.msk.bf16.mxu1 %vm321_vm1, %v6379_v7  ;;  %v5235_v14 = vld [vmem:[%s6532_s27 + $0xc] sm:$0xf]  ;;  %v6558_v15 = vld [vmem:[%s6532_s27 + $0x10] sm:$0xf]  ;;  %v6561_v16 = vld [vmem:[%s6532_s27 + $0x14] sm:$0x1] }
  0x14   : > { %5751 = vmatmul.mubr.msk.bf16.vlgmr.msra.gmra.mrb[0].mxu1 %vm321_vm1, %v6380_v9  ;;  %v2180_v17 = vshrl.u32 %v5235_v14, 16  ;;  %v2183_v18 = vshll.u32 %v5235_v14, 16  ;;  %v2189_v19 = vshll.u32 %v6558_v15, 16  ;;  %v2193_v20 = vshrl.u32 %v6558_v15, 16  ;;  %v5238_v21 = vld [vmem:[%s6532_s27 + $0x18] sm:$0xf] }
  0x15   : > { %5754 = vmatprep.mubr.msk.bf16.mxu1 %vm321_vm1, %v6381_v11  ;;  %5783 = vmatpush3.bf16.msra.mxu1 %v1101_v10  ;;  %v6382_v23 = vld [vmem:[%s6532_s27 + $0x24] sm:$0xff]   ;;  %v2199_v24 = vshll.u32 %v6561_v16, 16  ;;  %v6575_v25 = vld [vmem:[%s6532_s27 + $0x1c] sm:$0xf]  ;;  %v2204_v26 = vshrl.u32 %v5238_v21, 16  ;;  %v2207_v35 = vshll.u32 %v5238_v21, 16 }
  0x16   : > { %6346 = vmatprep.subr.msk.bf16.mxu1 %vm370_vm0, %v5137_v8  ;;  %v2182_v28 = vrot.slane %v2180_v17, 4  ;;  %v2185_v29 = vrot.slane %v2183_v18, 5  ;;  %v2191_v30 = vrot.slane %v2189_v19, 5  ;;  %v2195_v31 = vrot.slane %v2193_v20, 4  ;;  %v6581_v32 = vld [vmem:[%s6532_s27 + $0x20] sm:$0x1] }
  0x17   : > { %v2201_v33 = vrot.slane %v2199_v24, 5  ;;  %v2206_v34 = vrot.slane %v2204_v26, 4  ;;  %v2213_v36 = vshll.u32 %v6575_v25, 16  ;;  %v2217_v39 = vshrl.u32 %v6575_v25, 16  ;;  %v6383_v41 = vld [vmem:[%s6532_s27 + $0x30] sm:$0xff]   ;;  %v6384_v0 = vld [vmem:[%s6532_s27 + $0x3c] sm:$0xff]  }
  0x18   : > { %v2186_v37 = vor.u32 %v2185_v29, %v2182_v28  ;;  %v2196_v38 = vor.u32 %v2195_v31, %v2191_v30  ;;  %v2223_v40 = vshll.u32 %v6581_v32, 16  ;;  %v2923_v43 = vrot.slane %v6558_v15, 5  ;;  %v5241_v54 = vld [vmem:[%s6532_s27 + $0x24] sm:$0xf]  ;;  %v6604_v55 = vld [vmem:[%s6532_s27 + $0x28] sm:$0xf] }
  0x19   : > { %v2209_v44 = vrot.slane %v2207_v35, 5  ;;  %v2215_v45 = vrot.slane %v2213_v36, 5  ;;  %v2926_v49 = vrot.slane %v6561_v16, 5  ;;  %v2219_v50 = vrot.slane %v2217_v39, 4  ;;  %v6611_v59 = vld [vmem:[%s6532_s27 + $0x2c] sm:$0x1] }
  0x1a   : > { %v2187_v47 = vrot.slane %v2186_v37, 4  ;;  %v2197_v48 = vrot.slane %v2196_v38, 4  ;;  %v2225_v52 = vrot.slane %v2223_v40, 5  ;;  %v2930_v53 = vrot.slane %v6575_v25, 5  ;;  %v5244_v61 = vld [vmem:[%s6532_s27 + $0x30] sm:$0xf] }
  0x1b   : > { %v2210_v51 = vor.u32 %v2209_v44, %v2206_v34  ;;  %v2220_v58 = vor.u32 %v2219_v50, %v2215_v45  ;;  %v2228_v60 = vshrl.u32 %v5241_v54, 16  ;;  %v2231_v1 = vshll.u32 %v5241_v54, 16  ;;  %v6617_v3 = vld [vmem:[%s6532_s27 + $0x34] sm:$0xf]  ;;  %v6622_v10 = vld [vmem:[%s6532_s27 + $0x38] sm:$0x1] }
  0x1c   : > { %5755 = vmatmul.mubr.msk.bf16.gmra.mrb[4].mxu1 %vm321_vm1, %v6382_v23  ;;  %v2192_v56 = vsel %vm6589_vm4, %v2187_v47, %v2191_v30  ;;  %v2202_v57 = vsel %vm6589_vm4, %v2197_v48, %v2201_v33  ;;  %v2237_v2 = vshll.u32 %v6604_v55, 16  ;;  %v2241_v8 = vshrl.u32 %v6604_v55, 16  ;;  %v6385_v19 = vld [vmem:[%s6532_s27 + $0x48] sm:$0xff]   ;;  %v5247_v36 = vld [vmem:[%s6532_s27 + $0x3c] sm:$0xf] }
  0x1d   : > { %5758 = vmatprep.mubr.msk.bf16.mxu1 %vm321_vm1, %v6383_v41  ;;  %v5284_v62 = vcombine.low %v2192_v56, %v2202_v57  ;;  %v2211_v63 = vrot.slane %v2210_v51, 4  ;;  %v2221_v5 = vrot.slane %v2220_v58, 4  ;;  %v2230_v7 = vrot.slane %v2228_v60, 4  ;;  %v6643_v41 = vld [vmem:[%s6532_s27 + $0x40] sm:$0xf] }
  0x1e   : > { %v2247_v9 = vshll.u32 %v6611_v59, 16  ;;  %v2233_v14 = vrot.slane %v2231_v1, 5  ;;  %v2239_v17 = vrot.slane %v2237_v2, 5  ;;  %v2252_v18 = vshrl.u32 %v5244_v61, 16  ;;  %v6647_v50 = vld [vmem:[%s6532_s27 + $0x44] sm:$0x1] }
  0x1f   : > { %5886 = vmatprep.mubr.msk.bf16.mxu0 %vm321_vm1, %v5284_v62  ;;  %v2216_v11 = vsel %vm6589_vm4, %v2211_v63, %v2215_v45  ;;  %v2226_v20 = vsel %vm6589_vm4, %v2221_v5, %v2225_v52  ;;  %v2243_v21 = vrot.slane %v2241_v8, 4  ;;  %v2255_v24 = vshll.u32 %v5244_v61, 16  ;;  %v6386_v52 = vld [vmem:[%s6532_s27 + $0x54] sm:$0xff]   ;;  %v5250_v58 = vld [vmem:[%s6532_s27 + $0x48] sm:$0xf]  ;;  %v6387_v8 = vld [vmem:[%s6532_s27 + $0x60] sm:$0xff]  }
  0x20   : > { %v2249_v23 = vrot.slane %v2247_v9, 5  ;;  %v5285_v26 = vcombine.low %v2216_v11, %v2226_v20  ;;  %v2234_v28 = vor.u32 %v2233_v14, %v2230_v7  ;;  %v2254_v29 = vrot.slane %v2252_v18, 4  ;;  %v6660_v63 = vld [vmem:[%s6532_s27 + $0x4c] sm:$0xf]  ;;  %v6663_v7 = vld [vmem:[%s6532_s27 + $0x50] sm:$0x1] }
  0x21   : > { %v2261_v30 = vshll.u32 %v6617_v3, 16  ;;  %v2244_v31 = vor.u32 %v2243_v21, %v2239_v17  ;;  %v2257_v33 = vrot.slane %v2255_v24, 5  ;;  %v2265_v34 = vshrl.u32 %v6617_v3, 16 }
  0x22   : > { %v2271_v35 = vshll.u32 %v6622_v10, 16  ;;  %5887 = vmatmul.mubr.msk.bf16.vlgmr.msra.gmra.mrb[0].mxu0 %vm321_vm1, %v5285_v26  ;;  %v6638_v37 = vrot.slane %v2930_v53, 4  ;;  %v2933_v38 = vrot.slane %v6581_v32, 5  ;;  %v2235_v39 = vrot.slane %v2234_v28, 4  ;;  %v5253_v28 = vld [vmem:[%s6532_s27 + $0x54] sm:$0xf] }
  0x23   : > { %v2263_v40 = vrot.slane %v2261_v30, 5  ;;  %5919 = vmatpush3.bf16.msra.mxu0 %v6549_v12  ;;  %v2245_v44 = vrot.slane %v2244_v31, 4  ;;  %v2258_v45 = vor.u32 %v2257_v33, %v2254_v29  ;;  %v2267_v47 = vrot.slane %v2265_v34, 4  ;;  %v6678_v34 = vld [vmem:[%s6532_s27 + $0x58] sm:$0xf] }
  0x24   : > { %5759 = vmatmul.mubr.msk.bf16.gmra.mrb[8].mxu1 %vm321_vm1, %v6384_v0  ;;  %v2273_v48 = vrot.slane %v2271_v35, 5  ;;  %v2240_v51 = vsel %vm6589_vm4, %v2235_v39, %v2239_v17  ;;  %v2276_v54 = vshrl.u32 %v5247_v36, 16  ;;  %v2279_v56 = vshll.u32 %v5247_v36, 16  ;;  %6351 = vmatprep.subr.msk.bf16.mxu0 %vm370_vm0, %v6537_v6 }
  0x25   : > { %5762 = vmatprep.mubr.msk.bf16.mxu1 %vm321_vm1, %v6385_v19  ;;  %v2285_v57 = vshll.u32 %v6643_v41, 16  ;;  %v2250_v12 = vsel %vm6589_vm4, %v2245_v44, %v2249_v23  ;;  %v2259_v60 = vrot.slane %v2258_v45, 4  ;;  %v2268_v61 = vor.u32 %v2267_v47, %v2263_v40  ;;  %v6388_v44 = vld [vmem:[%s6532_s27 + $0x6c] sm:$0xff]   ;;  %v6683_v45 = vld [vmem:[%s6532_s27 + $0x5c] sm:$0x1] }
  0x26   : > { %v2289_v62 = vshrl.u32 %v6643_v41, 16  ;;  %v5286_v0 = vcombine.low %v2240_v51, %v2250_v12  ;;  %v2278_v1 = vrot.slane %v2276_v54, 4  ;;  %v2281_v2 = vrot.slane %v2279_v56, 5  ;;  %v5256_v54 = vld [vmem:[%s6532_s27 + $0x60] sm:$0xf] }
  0x27   : > { %v2287_v5 = vrot.slane %v2285_v57, 5  ;;  %v2264_v9 = vsel %vm6589_vm4, %v2259_v60, %v2263_v40  ;;  %v2269_v6 = vrot.slane %v2268_v61, 4  ;;  %v2295_v14 = vshll.u32 %v6647_v50, 16  ;;  %v6690_v56 = vld [vmem:[%s6532_s27 + $0x64] sm:$0xf] }
  0x28   : > { %v2291_v11 = vrot.slane %v2289_v62, 4  ;;  %5890 = vmatprep.mubr.msk.bf16.mxu0 %vm321_vm1, %v5286_v0  ;;  %v2282_v17 = vor.u32 %v2281_v2, %v2278_v1  ;;  %v2300_v18 = vshrl.u32 %v5250_v58, 16  ;;  %v2303_v19 = vshll.u32 %v5250_v58, 16  ;;  %v6696_v2 = vld [vmem:[%s6532_s27 + $0x68] sm:$0x1] }
  0x29   : > { %v2309_v20 = vshll.u32 %v6660_v63, 16  ;;  %v2274_v21 = vsel %vm6589_vm4, %v2269_v6, %v2273_v48  ;;  %v2297_v24 = vrot.slane %v2295_v14, 5  ;;  %v2313_v26 = vshrl.u32 %v6660_v63, 16 }
  0x2a   : > { %v2292_v23 = vor.u32 %v2291_v11, %v2287_v5  ;;  %v5287_v29 = vcombine.low %v2264_v9, %v2274_v21  ;;  %v2283_v30 = vrot.slane %v2282_v17, 4  ;;  %v2302_v31 = vrot.slane %v2300_v18, 4  ;;  %v5317_v21 = vld [vmem:[%s6532_s27 + $0x18] sm:$0xe] }
  0x2b   : > { %v2305_v33 = vrot.slane %v2303_v19, 5  ;;  %v2311_v36 = vrot.slane %v2309_v20, 5  ;;  %v2315_v39 = vrot.slane %v2313_v26, 4  ;;  %v2319_v40 = vshll.u32 %v6663_v7, 16  ;;  %v5316_v20 = vld [vmem:[%s6532_s27 + $0xc] sm:$0xe] }
  0x2c   : > { %5763 = vmatmul.mubr.msk.bf16.gmra.mrb[12].mxu1 %vm321_vm1, %v6386_v52  ;;  %v2293_v35 = vrot.slane %v2292_v23, 4  ;;  %5891 = vmatmul.mubr.msk.bf16.gmra.mrb[4].mxu0 %vm321_vm1, %v5287_v29  ;;  %v2288_v47 = vsel %vm6589_vm4, %v2283_v30, %v2287_v5  ;;  %v2324_v51 = vshrl.u32 %v5253_v28, 16  ;;  %v2327_v52 = vshll.u32 %v5253_v28, 16  ;;  %v6389_v5 = vld [vmem:[%s6532_s27 + $0x78] sm:$0xff]  }
  0x2d   : > { %5766 = vmatprep.mubr.msk.bf16.mxu1 %vm321_vm1, %v6387_v8  ;;  %v2306_v48 = vor.u32 %v2305_v33, %v2302_v31  ;;  %v2316_v58 = vor.u32 %v2315_v39, %v2311_v36  ;;  %v2321_v12 = vrot.slane %v2319_v40, 5  ;;  %v2333_v60 = vshll.u32 %v6678_v34, 16 }
  0x2e   : > { %v2298_v57 = vsel %vm6589_vm4, %v2293_v35, %v2297_v24  ;;  %v2326_v0 = vrot.slane %v2324_v51, 4  ;;  %v2329_v1 = vrot.slane %v2327_v52, 5  ;;  %v2337_v6 = vshrl.u32 %v6678_v34, 16 }
  0x2f   : > { %v5288_v61 = vcombine.low %v2288_v47, %v2298_v57  ;;  %v2307_v62 = vrot.slane %v2306_v48, 4  ;;  %v2317_v8 = vrot.slane %v2316_v58, 4  ;;  %v2335_v9 = vrot.slane %v2333_v60, 5  ;;  %v6391_v57 = vld [vmem:[%s6532_s27 + $0x90] sm:$0xff]   ;;  %v5318_v58 = vld [vmem:[%s6532_s27 + $0x24] sm:$0xe] }
  0x30   : > { %v2343_v11 = vshll.u32 %v6683_v45, 16  ;;  %v2330_v17 = vor.u32 %v2329_v1, %v2326_v0  ;;  %v2348_v18 = vshrl.u32 %v5256_v54, 16  ;;  %v2351_v19 = vshll.u32 %v5256_v54, 16  ;;  %v5319_v0 = vld [vmem:[%s6532_s27 + $0x30] sm:$0xe] }
  0x31   : > { %5894 = vmatprep.mubr.msk.bf16.mxu0 %vm321_vm1, %v5288_v61  ;;  %v2312_v14 = vsel %vm6589_vm4, %v2307_v62, %v2311_v36  ;;  %v2322_v23 = vsel %vm6589_vm4, %v2317_v8, %v2321_v12  ;;  %v2339_v24 = vrot.slane %v2337_v6, 4  ;;  %v2357_v28 = vshll.u32 %v6690_v56, 16 }
  0x32   : > { %v2345_v26 = vrot.slane %v2343_v11, 5  ;;  %v5289_v29 = vcombine.low %v2312_v14, %v2322_v23  ;;  %v2331_v30 = vrot.slane %v2330_v17, 4  ;;  %v2350_v31 = vrot.slane %v2348_v18, 4  ;;  %v5320_v14 = vld [vmem:[%s6532_s27 + $0x3c] sm:$0xe] }
  0x33   : > { %v2353_v33 = vrot.slane %v2351_v19, 5  ;;  %v2340_v35 = vor.u32 %v2339_v24, %v2335_v9  ;;  %v2359_v36 = vrot.slane %v2357_v28, 5  ;;  %v2361_v39 = vshrl.u32 %v6690_v56, 16  ;;  %v567_v24 = vld [vmem:[%s6532_s27] sm:$0xf] }
  0x34   : > { %5767 = vmatmul.mubr.msk.bf16.gmra.mrb[16].mxu1 %vm321_vm1, %v6388_v44  ;;  %v2367_v40 = vshll.u32 %v6696_v2, 16  ;;  %v6390_v44 = vld [vmem:[%s6532_s27 + $0x84] sm:$0xff]   ;;  %5895 = vmatmul.mubr.msk.bf16.gmra.mrb[8].mxu0 %vm321_vm1, %v5289_v29  ;;  %v2336_v48 = vsel %vm6589_vm4, %v2331_v30, %v2335_v9  ;;  %v5332_v52 = vrot.slane %v5316_v20, 9  ;;  %v2925_v54 = vrot.slane %v2923_v43, 4 }
  0x35   : > { %5770 = vmatprep.mubr.msk.bf16.mxu1 %vm321_vm1, %v6389_v5  ;;  %v2354_v51 = vor.u32 %v2353_v33, %v2350_v31  ;;  %v2341_v12 = vrot.slane %v2340_v35, 4  ;;  %v2363_v60 = vrot.slane %v2361_v39, 4  ;;  %v5333_v62 = vrot.slane %v5317_v21, 9  ;;  %v5321_v20 = vld [vmem:[%s6532_s27 + $0x48] sm:$0xe]  ;;  %v6392_v31 = vld [vmem:[%s6532_s27 + $0x9c] sm:$0xff]  }
  0x36   : > { %v2369_v61 = vrot.slane %v2367_v40, 5  ;;  %v6733_v5 = vsel %vm6716_vm7, %v6638_v37, %v2933_v38  ;;  %v5334_v8 = vrot.slane %v5318_v58, 9  ;;  %v2924_v11 = vsel %vm6716_vm7, %v5332_v52, %v2923_v43  ;;  %v568_v30 = vld [vmem:[%s6532_s27 + $0x4] sm:$0xf]  ;;  %v6393_v35 = vld [vmem:[%s6532_s27 + $0xa8] sm:$0xff]  }
  0x37   : > { %v2355_v1 = vrot.slane %v2354_v51, 4  ;;  %v2346_v9 = vsel %vm6589_vm4, %v2341_v12, %v2345_v26  ;;  %v2364_v6 = vor.u32 %v2363_v60, %v2359_v36  ;;  %v2927_v32 = vsel %vm6716_vm7, %v2925_v54, %v2926_v49  ;;  %v570_v52 = vld [vmem:[%s6532_s27 + $0xc] sm:$0xf]  ;;  %v6803_v60 = vld [vmem:[%s6532_s27 + $0x10] sm:$0xf] }
  0x38   : > { %v5290_v17 = vcombine.low %v2336_v48, %v2346_v9  ;;  %v6752_v38 = vsel %vm6716_vm7, %v5333_v62, %v2930_v53  ;;  %v2937_v15 = vrot.slane %v6604_v55, 5  ;;  %v2940_v16 = vrot.slane %v6611_v59, 5  ;;  %v6794_v48 = vld [vmem:[%s6532_s27 + $0x8] sm:$0x1] }
  0x39   : > { %v2360_v37 = vsel %vm6589_vm4, %v2355_v1, %v2359_v36  ;;  %v2365_v43 = vrot.slane %v2364_v6, 4  ;;  %v5335_v49 = vrot.slane %v5319_v0, 9  ;;  %v2944_v18 = vrot.slane %v6617_v3, 5 }
  0x3a   : > { %5898 = vmatprep.mubr.msk.bf16.mxu0 %vm321_vm1, %v5290_v17  ;;  %v5349_v19 = vcombine.low %v2924_v11, %v2927_v32  ;;  %v2939_v25 = vrot.slane %v2937_v15, 4  ;;  %v2947_v53 = vrot.slane %v6622_v10, 5  ;;  %v5336_v55 = vrot.slane %v5320_v14, 9  ;;  %v6814_v11 = vld [vmem:[%s6532_s27 + $0x14] sm:$0x1] }
  0x3b   : > { %v2370_v21 = vsel %vm6589_vm4, %v2365_v43, %v2369_v61  ;;  %v6766_v59 = vsel %vm6716_vm7, %v5334_v8, %v2937_v15  ;;  %v2946_v3 = vrot.slane %v2944_v18, 4  ;;  %v2951_v23 = vrot.slane %v6643_v41, 5  ;;  %v5322_v43 = vld [vmem:[%s6532_s27 + $0x54] sm:$0xe] }
  0x3c   : > { %5771 = vmatmul.mubr.msk.bf16.gmra.mrb[20].mxu1 %vm321_vm1, %v6390_v44  ;;  %v5291_v26 = vcombine.low %v2360_v37, %v2370_v21  ;;  %v5350_v28 = vcombine.low %v6752_v38, %v6733_v5  ;;  %v2941_v10 = vsel %vm6716_vm7, %v2939_v25, %v2940_v16  ;;  %v2954_v29 = vrot.slane %v6647_v50, 5  ;;  %v6394_v25 = vld [vmem:[%s6532_s27 + $0xb4] sm:$0xff]  }
  0x3d   : > { %5774 = vmatprep.mubr.msk.bf16.mxu1 %vm321_vm1, %v6391_v57  ;;  %v6779_v33 = vsel %vm6716_vm7, %v5335_v49, %v2944_v18  ;;  %v6783_v41 = vsel %vm6716_vm7, %v2946_v3, %v2947_v53  ;;  %v2953_v36 = vrot.slane %v2951_v23, 4  ;;  %v5337_v39 = vrot.slane %v5321_v20, 9 }
  0x3e   : > { %5899 = vmatmul.mubr.msk.bf16.gmra.mrb[12].mxu0 %vm321_vm1, %v5291_v26  ;;  %v5351_v40 = vcombine.low %v6766_v59, %v2941_v10  ;;  %v6790_v50 = vsel %vm6716_vm7, %v5336_v55, %v2951_v23  ;;  %v2958_v44 = vrot.slane %v6660_v63, 5  ;;  %v619_v51 = vshrl.u32 %v567_v24, 16  ;;  %v5323_v59 = vld [vmem:[%s6532_s27 + $0x60] sm:$0xe]  ;;  %v573_v10 = vld [vmem:[%s6532_s27 + $0x18] sm:$0xf] }
  0x3f   : > { %5920 = vmatprep.mubr.msk.bf16.mxu0 %vm321_vm1, %v5349_v19  ;;  %v6800_v54 = vsel %vm6716_vm7, %v2953_v36, %v2954_v29  ;;  %v622_v57 = vshll.u32 %v567_v24, 16  ;;  %v628_v58 = vshll.u32 %v568_v30, 16  ;;  %v632_v12 = vshrl.u32 %v568_v30, 16 }
  0x40   : > { %v5352_v61 = vcombine.low %v6779_v33, %v6783_v41  ;;  %v2960_v63 = vrot.slane %v2958_v44, 4  ;;  %v2961_v62 = vrot.slane %v6663_v7, 5  ;;  %v621_v0 = vrot.slane %v619_v51, 4  ;;  %v5260_v41 = vld [vmem:[%s6532_s27 + $0x70] sm:$0xf] }
  0x41   : > { %v624_v1 = vrot.slane %v622_v57, 5  ;;  %v630_v5 = vrot.slane %v628_v58, 5  ;;  %v634_v8 = vrot.slane %v632_v12, 4  ;;  %v638_v9 = vshll.u32 %v6794_v48, 16  ;;  %v6853_v58 = vld [vmem:[%s6532_s27 + $0x20] sm:$0x1] }
  0x42   : > { %v5353_v6 = vcombine.low %v6790_v50, %v6800_v54  ;;  %v643_v32 = vshrl.u32 %v570_v52, 16  ;;  %v646_v14 = vshll.u32 %v570_v52, 16  ;;  %v652_v7 = vshll.u32 %v6803_v60, 16 }
  0x43   : > { %v6819_v17 = vsel %vm6716_vm7, %v5337_v39, %v2958_v44  ;;  %v625_v37 = vor.u32 %v624_v1, %v621_v0  ;;  %v635_v38 = vor.u32 %v634_v8, %v630_v5  ;;  %v640_v15 = vrot.slane %v638_v9, 5  ;;  %v576_v1 = vld [vmem:[%s6532_s27 + $0x24] sm:$0xf] }
  0x44   : > { %5775 = vmatmul.mubr.msk.bf16.gmra.mrb[24].mxu1 %vm321_vm1, %v6392_v31  ;;  %v645_v16 = vrot.slane %v643_v32, 4  ;;  %v648_v49 = vrot.slane %v646_v14, 5  ;;  %v654_v18 = vrot.slane %v652_v7, 5  ;;  %v656_v19 = vshrl.u32 %v6803_v60, 16  ;;  %v6873_v14 = vld [vmem:[%s6532_s27 + $0x28] sm:$0xf] }
  0x45   : > { %5778 = vmatprep.mubr.msk.bf16.mxu1 %vm321_vm1, %v6393_v35  ;;  %v6826_v53 = vsel %vm6716_vm7, %v2960_v63, %v2961_v62  ;;  %v626_v55 = vrot.slane %v625_v37, 4  ;;  %v636_v20 = vrot.slane %v635_v38, 4  ;;  %v662_v21 = vshll.u32 %v6814_v11, 16  ;;  %v6841_v35 = vld [vmem:[%s6532_s27 + $0x1c] sm:$0xf] }
  0x46   : > { %5921 = vmatmul.mubr.msk.bf16.vlgmr.msra.gmra.mrb[0].mxu0 %vm321_vm1, %v5350_v28  ;;  %v649_v3 = vor.u32 %v648_v49, %v645_v16  ;;  %v658_v23 = vrot.slane %v656_v19, 4  ;;  %v5338_v24 = vrot.slane %v5322_v43, 9  ;;  %v2965_v26 = vrot.slane %v6678_v34, 5  ;;  %v5324_v19 = vld [vmem:[%s6532_s27 + $0x6c] sm:$0xe] }
  0x47   : > { %5953 = vmatpush3.bf16.msra.mxu0 %v6553_v13  ;;  %5924 = vmatprep.mubr.msk.bf16.mxu0 %vm321_vm1, %v5351_v40  ;;  %v631_v29 = vsel %vm6589_vm4, %v626_v55, %v630_v5  ;;  %v641_v30 = vsel %vm6589_vm4, %v636_v20, %v640_v15  ;;  %v664_v31 = vrot.slane %v662_v21, 5  ;;  %v2968_v28 = vrot.slane %v6683_v45, 5  ;;  %v6878_v15 = vld [vmem:[%s6532_s27 + $0x2c] sm:$0x1] }
  0x48   : > { %v5089_v36 = vcombine.low %v631_v29, %v641_v30  ;;  %v650_v39 = vrot.slane %v649_v3, 4  ;;  %v659_v34 = vor.u32 %v658_v23, %v654_v18  ;;  %v5339_v44 = vrot.slane %v5323_v59, 9  ;;  %6352 = vmatprep.subr.msk.bf16.mxu0 %vm370_vm0, %v6570_v22  ;;  %v5261_v23 = vld [vmem:[%s6532_s27 + $0x74] sm:$0x1] }
  0x49   : > { %v5354_v13 = vcombine.low %v6819_v17, %v6826_v53  ;;  %v2967_v40 = vrot.slane %v2965_v26, 4  ;;  %v2972_v51 = vrot.slane %v6690_v56, 5  ;;  %v667_v52 = vshrl.u32 %v573_v10, 16 }
  0x4a   : > { %v655_v45 = vsel %vm6589_vm4, %v650_v39, %v654_v18  ;;  %v660_v57 = vrot.slane %v659_v34, 4  ;;  %v670_v22 = vshll.u32 %v573_v10, 16  ;;  %v676_v12 = vshll.u32 %v6841_v35, 16 }
  0x4b   : > { %v6858_v63 = vsel %vm6716_vm7, %v5338_v24, %v2965_v26  ;;  %v6862_v56 = vsel %vm6716_vm7, %v2967_v40, %v2968_v28  ;;  %v2975_v62 = vrot.slane %v6696_v2, 5  ;;  %v669_v0 = vrot.slane %v667_v52, 4 }
  0x4c   : > { %5779 = vmatmul.mubr.msk.bf16.gmra.mrb[28].mxu1 %vm321_vm1, %v6394_v25  ;;  %v665_v5 = vsel %vm6589_vm4, %v660_v57, %v664_v31  ;;  %v6870_v8 = vsel %vm6716_vm7, %v5339_v44, %v2972_v51  ;;  %v2974_v9 = vrot.slane %v2972_v51, 4  ;;  %v672_v32 = vrot.slane %v670_v22, 5  ;;  %v5263_v31 = vld [vmem:[%s6532_s27 + $0x7c] sm:$0xf] }
  0x4d   : > { %5784 = vmatprep.mubr.msk.bf16.mxu1 %vm321_vm1, %v5089_v36  ;;  %v5090_v7 = vcombine.low %v655_v45, %v665_v5  ;;  %v678_v37 = vrot.slane %v676_v12, 5  ;;  %v680_v38 = vshrl.u32 %v6841_v35, 16  ;;  %v686_v2 = vshll.u32 %v6853_v58, 16  ;;  %v5325_v45 = vld [vmem:[%s6532_s27 + $0x78] sm:$0xe] }
  0x4e   : > { %5925 = vmatmul.mubr.msk.bf16.gmra.mrb[4].mxu0 %vm321_vm1, %v5352_v61  ;;  %v5355_v43 = vcombine.low %v6858_v63, %v6862_v56  ;;  %v673_v16 = vor.u32 %v672_v32, %v669_v0  ;;  %v691_v49 = vshrl.u32 %v576_v1, 16  ;;  %v694_v18 = vshll.u32 %v576_v1, 16  ;;  %v6909_v12 = vld [vmem:[%s6532_s27 + $0x80] sm:$0x1]  ;;  %v579_v5 = vld [vmem:[%s6532_s27 + $0x30] sm:$0xf] }
  0x4f   : > { %5928 = vmatprep.mubr.msk.bf16.mxu0 %vm321_vm1, %v5353_v6  ;;  %v682_v25 = vrot.slane %v680_v38, 4  ;;  %v688_v55 = vrot.slane %v686_v2, 5  ;;  %v700_v20 = vshll.u32 %v6873_v14, 16  ;;  %v704_v33 = vshrl.u32 %v6873_v14, 16 }
  0x50   : > { %v674_v61 = vrot.slane %v673_v16, 4  ;;  %v693_v21 = vrot.slane %v691_v49, 4  ;;  %v696_v59 = vrot.slane %v694_v18, 5  ;;  %v710_v3 = vshll.u32 %v6878_v15, 16 }
  0x51   : > { %v683_v24 = vor.u32 %v682_v25, %v678_v37  ;;  %v702_v50 = vrot.slane %v700_v20, 5  ;;  %v706_v54 = vrot.slane %v704_v33, 4  ;;  %v5340_v6 = vrot.slane %v5324_v19, 9  ;;  %v582_v19 = vld [vmem:[%s6532_s27 + $0x3c] sm:$0xf] }
  0x52   : > { %v679_v26 = vsel %vm6589_vm4, %v674_v61, %v678_v37  ;;  %v697_v10 = vor.u32 %v696_v59, %v693_v21  ;;  %v712_v29 = vrot.slane %v710_v3, 5  ;;  %v2979_v30 = vrot.slane %v5260_v41, 5  ;;  %v6949_v41 = vld [vmem:[%s6532_s27 + $0x40] sm:$0xf] }
  0x53   : > { %v684_v28 = vrot.slane %v683_v24, 4  ;;  %v707_v36 = vor.u32 %v706_v54, %v702_v50  ;;  %v2982_v39 = vrot.slane %v5261_v23, 5  ;;  %v2405_v34 = vshll.u32 %v5263_v31, 16  ;;  %v6952_v23 = vld [vmem:[%s6532_s27 + $0x44] sm:$0x1] }
  0x54   : > { %5785 = vmatmul.mubr.msk.bf16.vlgmr.msra.gmra.mrb[0].mxu1 %vm321_vm1, %v5090_v7  ;;  %v2976_v44 = vsel %vm6716_vm7, %v2974_v9, %v2975_v62  ;;  %v698_v40 = vrot.slane %v697_v10, 4  ;;  %v2981_v51 = vrot.slane %v2979_v30, 4  ;;  %v2409_v52 = vshrl.u32 %v5263_v31, 16  ;;  %v6925_v9 = vld [vmem:[%s6532_s27 + $0x34] sm:$0xf] }
  0x55   : > { %5817 = vmatpush3.bf16.msra.mxu1 %v6578_v27  ;;  %v689_v27 = vsel %vm6589_vm4, %v684_v28, %v688_v55  ;;  %v708_v57 = vrot.slane %v707_v36, 4  ;;  %v2980_v22 = vsel %vm6716_vm7, %v5340_v6, %v2979_v30  ;;  %v6911_v63 = vrot.slane %v2405_v34, 5  ;;  %v6933_v7 = vld [vmem:[%s6532_s27 + $0x38] sm:$0x1]  ;;  %v5266_v28 = vld [vmem:[%s6532_s27 + $0x88] sm:$0xf] }
  0x56   : > { %5929 = vmatmul.mubr.msk.bf16.gmra.mrb[8].mxu0 %vm321_vm1, %v5354_v13  ;;  %v5091_v56 = vcombine.low %v679_v26, %v689_v27  ;;  %v703_v62 = vsel %vm6589_vm4, %v698_v40, %v702_v50  ;;  %v2983_v0 = vsel %vm6716_vm7, %v2981_v51, %v2982_v39  ;;  %v6921_v1 = vrot.slane %v2409_v52, 4  ;;  %v5326_v26 = vld [vmem:[%s6532_s27 + $0x84] sm:$0xe]  ;;  %v5267_v36 = vld [vmem:[%s6532_s27 + $0x8c] sm:$0x1] }
  0x57   : > { %5932 = vmatprep.mubr.msk.bf16.mxu0 %vm321_vm1, %v5355_v43  ;;  %v5356_v32 = vcombine.low %v6870_v8, %v2976_v44  ;;  %v713_v17 = vsel %vm6589_vm4, %v708_v57, %v712_v29  ;;  %v5341_v13 = vrot.slane %v5325_v45, 9  ;;  %v5357_v38 = vcombine.low %v2980_v22, %v2983_v0  ;;  %v5269_v51 = vld [vmem:[%s6532_s27 + $0x94] sm:$0xf]  ;;  %v5327_v52 = vld [vmem:[%s6532_s27 + $0x90] sm:$0xe] }
  0x58   : > { %5788 = vmatprep.mubr.msk.bf16.mxu1 %vm321_vm1, %v5091_v56  ;;  %v5092_v37 = vcombine.low %v703_v62, %v713_v17  ;;  %v2986_v2 = vrot.slane %v5263_v31, 5  ;;  %v2989_v16 = vrot.slane %v6909_v12, 5  ;;  %v715_v43 = vshrl.u32 %v579_v5, 16  ;;  %v5270_v56 = vld [vmem:[%s6532_s27 + $0x98] sm:$0x1] }
  0x59   : > { %v718_v49 = vshll.u32 %v579_v5, 16  ;;  %v724_v8 = vshll.u32 %v6925_v9, 16  ;;  %v728_v18 = vshrl.u32 %v6925_v9, 16  ;;  %v734_v33 = vshll.u32 %v6933_v7, 16  ;;  %v585_v17 = vld [vmem:[%s6532_s27 + $0x48] sm:$0xf] }
  0x5a   : > { %v6945_v55 = vsel %vm6716_vm7, %v5341_v13, %v2986_v2  ;;  %v2988_v20 = vrot.slane %v2986_v2, 4  ;;  %v717_v61 = vrot.slane %v715_v43, 4  ;;  %v739_v54 = vshrl.u32 %v582_v19, 16 }
  0x5b   : > { %v720_v21 = vrot.slane %v718_v49, 5  ;;  %v726_v59 = vrot.slane %v724_v8, 5  ;;  %v730_v3 = vrot.slane %v728_v18, 4  ;;  %v736_v50 = vrot.slane %v734_v33, 5 }
  0x5c   : > { %5789 = vmatmul.mubr.msk.bf16.gmra.mrb[4].mxu1 %vm321_vm1, %v5092_v37  ;;  %v2990_v24 = vsel %vm6716_vm7, %v2988_v20, %v2989_v16  ;;  %v742_v6 = vshll.u32 %v582_v19, 16  ;;  %v748_v31 = vshll.u32 %v6949_v41, 16  ;;  %v741_v39 = vrot.slane %v739_v54, 4  ;;  %v6974_v16 = vld [vmem:[%s6532_s27 + $0x4c] sm:$0xf] }
  0x5d   : > { %v5358_v10 = vcombine.low %v6945_v55, %v2990_v24  ;;  %v721_v29 = vor.u32 %v720_v21, %v717_v61  ;;  %v731_v30 = vor.u32 %v730_v3, %v726_v59  ;;  %v752_v44 = vshrl.u32 %v6949_v41, 16  ;;  %v6979_v19 = vld [vmem:[%s6532_s27 + $0x50] sm:$0x1]  ;;  %v588_v21 = vld [vmem:[%s6532_s27 + $0x54] sm:$0xf] }
  0x5e   : > { %5933 = vmatmul.mubr.msk.bf16.gmra.mrb[12].mxu0 %vm321_vm1, %v5356_v32  ;;  %v744_v34 = vrot.slane %v742_v6, 5  ;;  %v758_v40 = vshll.u32 %v6952_v23, 16  ;;  %v750_v57 = vrot.slane %v748_v31, 5  ;;  %v5342_v22 = vrot.slane %v5326_v26, 9 }
  0x5f   : > { %5936 = vmatprep.mubr.msk.bf16.mxu0 %vm321_vm1, %v5357_v38  ;;  %v722_v45 = vrot.slane %v721_v29, 4  ;;  %v732_v27 = vrot.slane %v731_v30, 4  ;;  %v754_v0 = vrot.slane %v752_v44, 4  ;;  %v2993_v32 = vrot.slane %v5266_v28, 5 }
  0x60   : > { %v745_v62 = vor.u32 %v744_v34, %v741_v39  ;;  %v760_v5 = vrot.slane %v758_v40, 5  ;;  %v2996_v2 = vrot.slane %v5267_v36, 5  ;;  %v5343_v38 = vrot.slane %v5327_v52, 9  ;;  %v6994_v39 = vld [vmem:[%s6532_s27 + $0x58] sm:$0xf] }
  0x61   : > { %v727_v13 = vsel %vm6589_vm4, %v722_v45, %v726_v59  ;;  %v737_v37 = vsel %vm6589_vm4, %v732_v27, %v736_v50  ;;  %v755_v8 = vor.u32 %v754_v0, %v750_v57  ;;  %v2994_v18 = vsel %vm6716_vm7, %v5342_v22, %v2993_v32  ;;  %v5272_v52 = vld [vmem:[%s6532_s27 + $0xa0] sm:$0xf] }
  0x62   : > { %v5093_v43 = vcombine.low %v727_v13, %v737_v37  ;;  %v746_v49 = vrot.slane %v745_v62, 4  ;;  %v2995_v55 = vrot.slane %v2993_v32, 4  ;;  %v3000_v20 = vrot.slane %v5269_v51, 5  ;;  %v5328_v62 = vld [vmem:[%s6532_s27 + $0x9c] sm:$0xe] }
  0x63   : > { %v3003_v33 = vrot.slane %v5270_v56, 5  ;;  %v763_v61 = vshrl.u32 %v585_v17, 16  ;;  %v756_v3 = vrot.slane %v755_v8, 4  ;;  %v766_v24 = vshll.u32 %v585_v17, 16  ;;  %v5273_v56 = vld [vmem:[%s6532_s27 + $0xa4] sm:$0x1] }
  0x64   : > { %5792 = vmatprep.mubr.msk.bf16.mxu1 %vm321_vm1, %v5093_v43  ;;  %v751_v59 = vsel %vm6589_vm4, %v746_v49, %v750_v57  ;;  %v772_v50 = vshll.u32 %v6974_v16, 16  ;;  %v2997_v54 = vsel %vm6716_vm7, %v2995_v55, %v2996_v2  ;;  %v3001_v6 = vsel %vm6716_vm7, %v5343_v38, %v3000_v20  ;;  %v5275_v13 = vld [vmem:[%s6532_s27 + $0xac] sm:$0xf]  ;;  %v5329_v37 = vld [vmem:[%s6532_s27 + $0xa8] sm:$0xe] }
  0x65   : > { %v3002_v26 = vrot.slane %v3000_v20, 4  ;;  %v765_v29 = vrot.slane %v763_v61, 4  ;;  %v761_v30 = vsel %vm6589_vm4, %v756_v3, %v760_v5  ;;  %v5359_v31 = vcombine.low %v2994_v18, %v2997_v54  ;;  %v5276_v8 = vld [vmem:[%s6532_s27 + $0xb0] sm:$0x1]  ;;  %v591_v18 = vld [vmem:[%s6532_s27 + $0x60] sm:$0xf] }
  0x66   : > { %5937 = vmatmul.mubr.msk.bf16.gmra.mrb[16].mxu0 %vm321_vm1, %v5358_v10  ;;  %v768_v28 = vrot.slane %v766_v24, 5  ;;  %v774_v36 = vrot.slane %v772_v50, 5  ;;  %v5094_v34 = vcombine.low %v751_v59, %v761_v30  ;;  %v776_v40 = vshrl.u32 %v6974_v16, 16  ;;  %v7001_v10 = vld [vmem:[%s6532_s27 + $0x5c] sm:$0x1] }
  0x67   : > { %v3004_v44 = vsel %vm6716_vm7, %v3002_v26, %v3003_v33  ;;  %v782_v51 = vshll.u32 %v6979_v19, 16  ;;  %5940 = vmatprep.mubr.msk.bf16.mxu0 %vm321_vm1, %v5359_v31  ;;  %v787_v57 = vshrl.u32 %v588_v21, 16  ;;  %v790_v22 = vshll.u32 %v588_v21, 16 }
  0x68   : > { %v5360_v45 = vcombine.low %v3001_v6, %v3004_v44  ;;  %v769_v27 = vor.u32 %v768_v28, %v765_v29  ;;  %5793 = vmatmul.mubr.msk.bf16.gmra.mrb[8].mxu1 %vm321_vm1, %v5094_v34  ;;  %v778_v0 = vrot.slane %v776_v40, 4  ;;  %v796_v32 = vshll.u32 %v6994_v39, 16  ;;  %v7023_v40 = vld [vmem:[%s6532_s27 + $0x64] sm:$0xf] }
  0x69   : > { %v784_v5 = vrot.slane %v782_v51, 5  ;;  %v800_v17 = vshrl.u32 %v6994_v39, 16  ;;  %v789_v38 = vrot.slane %v787_v57, 4  ;;  %v792_v43 = vrot.slane %v790_v22, 5  ;;  %v7032_v22 = vld [vmem:[%s6532_s27 + $0x68] sm:$0x1] }
  0x6a   : > { %v770_v2 = vrot.slane %v769_v27, 4  ;;  %v806_v49 = vshll.u32 %v7001_v10, 16  ;;  %v779_v55 = vor.u32 %v778_v0, %v774_v36  ;;  %v798_v20 = vrot.slane %v796_v32, 5 }
  0x6b   : > { %v802_v33 = vrot.slane %v800_v17, 4  ;;  %v5344_v61 = vrot.slane %v5328_v62, 9  ;;  %v793_v59 = vor.u32 %v792_v43, %v789_v38  ;;  %v3007_v24 = vrot.slane %v5272_v52, 5  ;;  %v7036_v62 = vld [vmem:[%s6532_s27 + $0x70] sm:$0xf] }
  0x6c   : > { %v775_v21 = vsel %vm6589_vm4, %v770_v2, %v774_v36  ;;  %v808_v3 = vrot.slane %v806_v49, 5  ;;  %v780_v50 = vrot.slane %v779_v55, 4  ;;  %v3010_v6 = vrot.slane %v5273_v56, 5  ;;  %v594_v56 = vld [vmem:[%s6532_s27 + $0x6c] sm:$0xf] }
  0x6d   : > { %v803_v54 = vor.u32 %v802_v33, %v798_v20  ;;  %v5345_v26 = vrot.slane %v5329_v37, 9  ;;  %v794_v29 = vrot.slane %v793_v59, 4  ;;  %v3008_v30 = vsel %vm6716_vm7, %v5344_v61, %v3007_v24  ;;  %v5278_v49 = vld [vmem:[%s6532_s27 + $0xb8] sm:$0xf] }
  0x6e   : > { %5941 = vmatmul.mubr.msk.bf16.gmra.mrb[20].mxu0 %vm321_vm1, %v5360_v45  ;;  %v3009_v31 = vrot.slane %v3007_v24, 4  ;;  %v3014_v28 = vrot.slane %v5275_v13, 5  ;;  %v785_v36 = vsel %vm6589_vm4, %v780_v50, %v784_v5  ;;  %v3017_v44 = vrot.slane %v5276_v8, 5  ;;  %v7041_v13 = vld [vmem:[%s6532_s27 + $0x74] sm:$0x1] }
  0x6f   : > { %v804_v34 = vrot.slane %v803_v54, 4  ;;  %v811_v51 = vshrl.u32 %v591_v18, 16  ;;  %v5095_v52 = vcombine.low %v775_v21, %v785_v36  ;;  %v799_v45 = vsel %vm6589_vm4, %v794_v29, %v798_v20  ;;  %v5330_v24 = vld [vmem:[%s6532_s27 + $0xb4] sm:$0xe]  ;;  %v5331_v29 = vld [vmem:[%s6532_s27 + $0xc0] sm:$0xe] }
  0x70   : > { %v3011_v27 = vsel %vm6716_vm7, %v3009_v31, %v3010_v6  ;;  %v3015_v57 = vsel %vm6716_vm7, %v5345_v26, %v3014_v28  ;;  %v3016_v32 = vrot.slane %v3014_v28, 4  ;;  %v814_v2 = vshll.u32 %v591_v18, 16 }
  0x71   : > { %v809_v0 = vsel %vm6589_vm4, %v804_v34, %v808_v3  ;;  %v5361_v5 = vcombine.low %v3008_v30, %v3011_v27  ;;  %v813_v17 = vrot.slane %v811_v51, 4  ;;  %5796 = vmatprep.mubr.msk.bf16.mxu1 %vm321_vm1, %v5095_v52  ;;  %v820_v38 = vshll.u32 %v7023_v40, 16  ;;  %v5279_v3 = vld [vmem:[%s6532_s27 + $0xbc] sm:$0x1]  ;;  %v5281_v34 = vld [vmem:[%s6532_s27 + $0xc4] sm:$0xf] }
  0x72   : > { %v5096_v37 = vcombine.low %v799_v45, %v809_v0  ;;  %v824_v43 = vshrl.u32 %v7023_v40, 16  ;;  %v3018_v8 = vsel %vm6716_vm7, %v3016_v32, %v3017_v44  ;;  %v830_v55 = vshll.u32 %v7032_v22, 16  ;;  %v5282_v27 = vld [vmem:[%s6532_s27 + $0xc8] sm:$0x1] }
  0x73   : > { %5944 = vmatprep.mubr.msk.bf16.mxu0 %vm321_vm1, %v5361_v5  ;;  %v835_v20 = vshrl.u32 %v594_v56, 16  ;;  %v838_v33 = vshll.u32 %v594_v56, 16  ;;  %v5362_v61 = vcombine.low %v3015_v57, %v3018_v8  ;;  %v816_v18 = vrot.slane %v814_v2, 5  ;;  %v597_v57 = vld [vmem:[%s6532_s27 + $0x78] sm:$0xf] }
  0x74   : > { %5797 = vmatmul.mubr.msk.bf16.gmra.mrb[12].mxu1 %vm321_vm1, %v5096_v37  ;;  %v822_v21 = vrot.slane %v820_v38, 5  ;;  %v826_v59 = vrot.slane %v824_v43, 4  ;;  %v832_v50 = vrot.slane %v830_v55, 5  ;;  %v844_v26 = vshll.u32 %v7036_v62, 16  ;;  %v7067_v43 = vld [vmem:[%s8200_s1 + $0x6] sm:$0x3] }
  0x75   : > { %v837_v54 = vrot.slane %v835_v20, 4  ;;  %v840_v6 = vrot.slane %v838_v33, 5  ;;  %v817_v30 = vor.u32 %v816_v18, %v813_v17  ;;  %v848_v28 = vshrl.u32 %v7036_v62, 16  ;;  %v7074_v33 = vld [vmem:[%s6532_s27 + $0x7c] sm:$0xf]  ;;  %6347 = vmatprep.subr.msk.bf16.mxu1 %vm370_vm0, %v7067_v43 }
  0x76   : > { %5945 = vmatmul.mubr.msk.bf16.gmra.mrb[24].mxu0 %vm321_vm1, %v5362_v61  ;;  %v827_v31 = vor.u32 %v826_v59, %v822_v21  ;;  %v854_v36 = vshll.u32 %v7041_v13, 16  ;;  %v846_v51 = vrot.slane %v844_v26, 5  ;;  %v5346_v52 = vrot.slane %v5330_v24, 9  ;;  %v7077_v61 = vld [vmem:[%s6532_s27 + $0x80] sm:$0x1] }
  0x77   : > { %v841_v44 = vor.u32 %v840_v6, %v837_v54  ;;  %v3021_v45 = vrot.slane %v5278_v49, 5  ;;  %v818_v56 = vrot.slane %v817_v30, 4  ;;  %v850_v5 = vrot.slane %v848_v28, 4  ;;  %v600_v24 = vld [vmem:[%s6532_s27 + $0x84] sm:$0xf] }
  0x78   : > { %v828_v0 = vrot.slane %v827_v31, 4  ;;  %v856_v32 = vrot.slane %v854_v36, 5  ;;  %v3024_v38 = vrot.slane %v5279_v3, 5  ;;  %v5347_v20 = vrot.slane %v5331_v29, 9  ;;  %v7087_v29 = vld [vmem:[%s6532_s27 + $0x88] sm:$0xf] }
  0x79   : > { %v842_v37 = vrot.slane %v841_v44, 4  ;;  %v3022_v17 = vsel %vm6716_vm7, %v5346_v52, %v3021_v45  ;;  %v3023_v2 = vrot.slane %v3021_v45, 4  ;;  %v823_v49 = vsel %vm6589_vm4, %v818_v56, %v822_v21  ;;  %v7099_v45 = vld [vmem:[%s6532_s27 + $0x8c] sm:$0x1] }
  0x7a   : > { %v833_v8 = vsel %vm6589_vm4, %v828_v0, %v832_v50  ;;  %v851_v55 = vor.u32 %v850_v5, %v846_v51  ;;  %v3028_v3 = vrot.slane %v5281_v34, 5  ;;  %v3031_v6 = vrot.slane %v5282_v27, 5  ;;  %v6395_v27 = vld [vmem:[%s6532_s27 + $0x18] sm:$0xff]  }
  0x7b   : > { %v5097_v18 = vcombine.low %v823_v49, %v833_v8  ;;  %v847_v59 = vsel %vm6589_vm4, %v842_v37, %v846_v51  ;;  %v3025_v21 = vsel %vm6716_vm7, %v3023_v2, %v3024_v38  ;;  %v859_v26 = vshrl.u32 %v597_v57, 16  ;;  %v603_v37 = vld [vmem:[%s6532_s27 + $0x90] sm:$0xf]  ;;  %v7106_v49 = vld [vmem:[%s6532_s27 + $0x94] sm:$0xf] }
  0x7c   : > { %v852_v50 = vrot.slane %v851_v55, 4  ;;  %v5363_v54 = vcombine.low %v3022_v17, %v3025_v21  ;;  %v3029_v30 = vsel %vm6716_vm7, %v5347_v20, %v3028_v3  ;;  %v3030_v31 = vrot.slane %v3028_v3, 4 }
  0x7d   : > { %5800 = vmatprep.mubr.msk.bf16.mxu1 %vm321_vm1, %v5097_v18  ;;  %v862_v28 = vshll.u32 %v597_v57, 16  ;;  %v868_v36 = vshll.u32 %v7074_v33, 16  ;;  %v861_v44 = vrot.slane %v859_v26, 4  ;;  %v872_v51 = vshrl.u32 %v7074_v33, 16 }
  0x7e   : > { %v857_v34 = vsel %vm6589_vm4, %v852_v50, %v856_v32  ;;  %5948 = vmatprep.mubr.msk.bf16.mxu0 %vm321_vm1, %v5363_v54  ;;  %v878_v52 = vshll.u32 %v7077_v61, 16  ;;  %v3032_v57 = vsel %vm6716_vm7, %v3030_v31, %v3031_v6  ;;  %v883_v38 = vshrl.u32 %v600_v24, 16 }
  0x7f   : > { %v5098_v56 = vcombine.low %v847_v59, %v857_v34  ;;  %v864_v0 = vrot.slane %v862_v28, 5  ;;  %v870_v5 = vrot.slane %v868_v36, 5  ;;  %v5364_v32 = vcombine.low %v3029_v30, %v3032_v57  ;;  %v7112_v59 = vld [vmem:[%s6532_s27 + $0x98] sm:$0x1] }
  0x80   : > { %v874_v17 = vrot.slane %v872_v51, 4  ;;  %v880_v2 = vrot.slane %v878_v52, 5  ;;  %v886_v55 = vshll.u32 %v600_v24, 16  ;;  %v892_v20 = vshll.u32 %v7087_v29, 16  ;;  %v606_v24 = vld [vmem:[%s6532_s27 + $0x9c] sm:$0xf] }
  0x81   : > { %5801 = vmatmul.mubr.msk.bf16.gmra.mrb[16].mxu1 %vm321_vm1, %v5098_v56  ;;  %v865_v8 = vor.u32 %v864_v0, %v861_v44  ;;  %v896_v18 = vshrl.u32 %v7087_v29, 16  ;;  %5949 = vmatmul.mubr.msk.bf16.gmra.mrb[28].mxu0 %vm321_vm1, %v5364_v32  ;;  %v885_v3 = vrot.slane %v883_v38, 4  ;;  %v902_v50 = vshll.u32 %v7099_v45, 16  ;;  %v7119_v51 = vld [vmem:[%s6532_s27 + $0xa0] sm:$0xf]  ;;  %v6396_v32 = vld [vmem:[%s6532_s27 + $0x24] sm:$0xff]  }
  0x82   : > { %v875_v21 = vor.u32 %v874_v17, %v870_v5  ;;  %v907_v54 = vshrl.u32 %v603_v37, 16  ;;  %v888_v26 = vrot.slane %v886_v55, 5  ;;  %v894_v30 = vrot.slane %v892_v20, 5  ;;  %5954 = vmatprep.mubr.msk.bf16.mxu0 %vm321_vm1, %v6395_v27 }
  0x83   : > { %v866_v6 = vrot.slane %v865_v8, 4  ;;  %v898_v31 = vrot.slane %v896_v18, 4  ;;  %v904_v36 = vrot.slane %v902_v50, 5  ;;  %v910_v44 = vshll.u32 %v603_v37, 16  ;;  %v7130_v8 = vld [vmem:[%s6532_s27 + $0xa4] sm:$0x1] }
  0x84   : > { %v876_v28 = vrot.slane %v875_v21, 4  ;;  %v909_v34 = vrot.slane %v907_v54, 4  ;;  %v889_v56 = vor.u32 %v888_v26, %v885_v3  ;;  %v916_v0 = vshll.u32 %v7106_v49, 16  ;;  %v6397_v21 = vld [vmem:[%s6532_s27 + $0x30] sm:$0xff]   ;;  %v609_v26 = vld [vmem:[%s6532_s27 + $0xa8] sm:$0xf] }
  0x85   : > { %v871_v52 = vsel %vm6589_vm4, %v866_v6, %v870_v5  ;;  %v899_v57 = vor.u32 %v898_v31, %v894_v30  ;;  %v912_v17 = vrot.slane %v910_v44, 5  ;;  %v920_v38 = vshrl.u32 %v7106_v49, 16 }
  0x86   : > { %v881_v27 = vsel %vm6589_vm4, %v876_v28, %v880_v2  ;;  %v926_v37 = vshll.u32 %v7112_v59, 16  ;;  %v890_v20 = vrot.slane %v889_v56, 4  ;;  %v918_v18 = vrot.slane %v916_v0, 5 }
  0x87   : > { %v5099_v55 = vcombine.low %v871_v52, %v881_v27  ;;  %v900_v5 = vrot.slane %v899_v57, 4  ;;  %v913_v3 = vor.u32 %v912_v17, %v909_v34  ;;  %v922_v50 = vrot.slane %v920_v38, 4  ;;  %v7141_v52 = vld [vmem:[%s6532_s27 + $0xac] sm:$0xf]  ;;  %v7152_v38 = vld [vmem:[%s6532_s27 + $0xb0] sm:$0x1] }
  0x88   : > { %v928_v54 = vrot.slane %v926_v37, 5  ;;  %v931_v6 = vshrl.u32 %v606_v24, 16  ;;  %v895_v2 = vsel %vm6589_vm4, %v890_v20, %v894_v30  ;;  %v934_v28 = vshll.u32 %v606_v24, 16 }
  0x89   : > { %5804 = vmatprep.mubr.msk.bf16.mxu1 %vm321_vm1, %v5099_v55  ;;  %v905_v31 = vsel %vm6589_vm4, %v900_v5, %v904_v36  ;;  %v940_v44 = vshll.u32 %v7119_v51, 16  ;;  %5955 = vmatmul.mubr.msk.bf16.vlgmr.msra.gmra.mrb[0].mxu0 %vm321_vm1, %v6396_v32  ;;  %v914_v34 = vrot.slane %v913_v3, 4  ;;  %v923_v57 = vor.u32 %v922_v50, %v918_v18  ;;  %v612_v50 = vld [vmem:[%s6532_s27 + $0xb4] sm:$0xf] }
  0x8a   : > { %v5100_v56 = vcombine.low %v895_v2, %v905_v31  ;;  %v933_v0 = vrot.slane %v931_v6, 4  ;;  %5987 = vmatpush3.bf16.msra.mxu0 %v6596_v46  ;;  %v936_v27 = vrot.slane %v934_v28, 5  ;;  %v944_v36 = vshrl.u32 %v7119_v51, 16  ;;  %5958 = vmatprep.mubr.msk.bf16.mxu0 %vm321_vm1, %v6397_v21  ;;  %v6398_v6 = vld [vmem:[%s6532_s27 + $0x3c] sm:$0xff]   ;;  %v7161_v28 = vld [vmem:[%s6532_s27 + $0xb8] sm:$0xf] }
  0x8b   : > { %v942_v30 = vrot.slane %v940_v44, 5  ;;  %v950_v24 = vshll.u32 %v7130_v8, 16  ;;  %v919_v32 = vsel %vm6589_vm4, %v914_v34, %v918_v18  ;;  %v924_v17 = vrot.slane %v923_v57, 4  ;;  %v6399_v57 = vld [vmem:[%s6532_s27 + $0x48] sm:$0xff]  }
  0x8c   : > { %5805 = vmatmul.mubr.msk.bf16.gmra.mrb[20].mxu1 %vm321_vm1, %v5100_v56  ;;  %v955_v46 = vshrl.u32 %v609_v26, 16  ;;  %v958_v37 = vshll.u32 %v609_v26, 16  ;;  %v937_v55 = vor.u32 %v936_v27, %v933_v0  ;;  %v946_v20 = vrot.slane %v944_v36, 4 }
  0x8d   : > { %v952_v5 = vrot.slane %v950_v24, 5  ;;  %v964_v3 = vshll.u32 %v7141_v52, 16  ;;  %v929_v21 = vsel %vm6589_vm4, %v924_v17, %v928_v54  ;;  %v968_v18 = vshrl.u32 %v7141_v52, 16  ;;  %v7168_v54 = vld [vmem:[%s8200_s1 + $0x10] sm:$0x3] }
  0x8e   : > { %v957_v2 = vrot.slane %v955_v46, 4  ;;  %v960_v31 = vrot.slane %v958_v37, 5  ;;  %v5101_v44 = vcombine.low %v919_v32, %v929_v21  ;;  %v938_v26 = vrot.slane %v937_v55, 4  ;;  %v7174_v46 = vld [vmem:[%s6532_s27 + $0xbc] sm:$0x1]  ;;  %6353 = vmatprep.subr.msk.bf16.mxu0 %vm370_vm0, %v7168_v54 }
  0x8f   : > { %v947_v56 = vor.u32 %v946_v20, %v942_v30  ;;  %v966_v34 = vrot.slane %v964_v3, 5  ;;  %v970_v27 = vrot.slane %v968_v18, 4  ;;  %v974_v36 = vshll.u32 %v7152_v38, 16 }
  0x90   : > { %v961_v0 = vor.u32 %v960_v31, %v957_v2  ;;  %v979_v24 = vshrl.u32 %v612_v50, 16  ;;  %5808 = vmatprep.mubr.msk.bf16.mxu1 %vm321_vm1, %v5101_v44  ;;  %v943_v32 = vsel %vm6589_vm4, %v938_v26, %v942_v30  ;;  %v982_v37 = vshll.u32 %v612_v50, 16  ;;  %v1296_v31 = vld [vmem:[%s6532_s27] sm:$0xe]  ;;  %v1297_v26 = vld [vmem:[%s6532_s27 + $0xc] sm:$0xe] }
  0x91   : > { %v948_v17 = vrot.slane %v947_v56, 4  ;;  %v988_v55 = vshll.u32 %v7161_v28, 16  ;;  %5959 = vmatmul.mubr.msk.bf16.gmra.mrb[4].mxu0 %vm321_vm1, %v6398_v6  ;;  %v971_v3 = vor.u32 %v970_v27, %v966_v34  ;;  %v976_v21 = vrot.slane %v974_v36, 5 }
  0x92   : > { %v962_v20 = vrot.slane %v961_v0, 4  ;;  %v981_v2 = vrot.slane %v979_v24, 4  ;;  %v984_v18 = vrot.slane %v982_v37, 5  ;;  %v992_v50 = vshrl.u32 %v7161_v28, 16  ;;  %5962 = vmatprep.mubr.msk.bf16.mxu0 %vm321_vm1, %v6399_v57  ;;  %v1298_v37 = vld [vmem:[%s6532_s27 + $0x18] sm:$0xe] }
  0x93   : > { %v953_v30 = vsel %vm6589_vm4, %v948_v17, %v952_v5  ;;  %v990_v44 = vrot.slane %v988_v55, 5  ;;  %v972_v0 = vrot.slane %v971_v3, 4  ;;  %v998_v27 = vshll.u32 %v7174_v46, 16  ;;  %v6427_v5 = vld [vmem:[%s6532_s27 + $0x4] sm:$0xf] }
  0x94   : > { %v5102_v56 = vcombine.low %v943_v32, %v953_v30  ;;  %v967_v6 = vsel %vm6589_vm4, %v962_v20, %v966_v34  ;;  %v985_v36 = vor.u32 %v984_v18, %v981_v2  ;;  %v994_v24 = vrot.slane %v992_v50, 4  ;;  %v6400_v32 = vld [vmem:[%s6532_s27 + $0x54] sm:$0xff]   ;;  %v6401_v18 = vld [vmem:[%s6532_s27 + $0x60] sm:$0xff]  }
  0x95   : > { %v5121_v25 = vrot.slane %v1296_v31, 9  ;;  %v1365_v17 = vrot.slane %v6427_v5, 5  ;;  %v977_v57 = vsel %vm6589_vm4, %v972_v0, %v976_v21  ;;  %v1000_v55 = vrot.slane %v998_v27, 5 }
  0x96   : > { %5809 = vmatmul.mubr.msk.bf16.gmra.mrb[24].mxu1 %vm321_vm1, %v5102_v56  ;;  %v1368_v30 = vrot.slane %v6794_v48, 5  ;;  %v5122_v34 = vrot.slane %v1297_v26, 9  ;;  %v5103_v20 = vcombine.low %v967_v6, %v977_v57  ;;  %v986_v3 = vrot.slane %v985_v36, 4 }
  0x97   : > { %v995_v2 = vor.u32 %v994_v24, %v990_v44  ;;  %v1366_v31 = vsel %vm6716_vm7, %v5121_v25, %v1365_v17  ;;  %v1367_v50 = vrot.slane %v1365_v17, 4  ;;  %v1372_v56 = vrot.slane %v6803_v60, 5  ;;  %v1299_v25 = vld [vmem:[%s6532_s27 + $0x24] sm:$0xe] }
  0x98   : > { %v1375_v5 = vrot.slane %v6814_v11, 5  ;;  %v5123_v21 = vrot.slane %v1298_v37, 9  ;;  %5812 = vmatprep.mubr.msk.bf16.mxu1 %vm321_vm1, %v5103_v20  ;;  %v991_v48 = vsel %vm6589_vm4, %v986_v3, %v990_v44  ;;  %v1379_v6 = vrot.slane %v6841_v35, 5  ;;  %v1300_v35 = vld [vmem:[%s6532_s27 + $0x30] sm:$0xe] }
  0x99   : > { %v996_v26 = vrot.slane %v995_v2, 4  ;;  %v1382_v0 = vrot.slane %v6853_v58, 5  ;;  %5963 = vmatmul.mubr.msk.bf16.gmra.mrb[8].mxu0 %vm321_vm1, %v6400_v32  ;;  %v1369_v60 = vsel %vm6716_vm7, %v1367_v50, %v1368_v30  ;;  %v7212_v11 = vsel %vm6716_vm7, %v5122_v34, %v1372_v56  ;;  %v1301_v34 = vld [vmem:[%s6532_s27 + $0x3c] sm:$0xe]  ;;  %v1303_v50 = vld [vmem:[%s6532_s27 + $0x54] sm:$0xe] }
  0x9a   : > { %v1374_v27 = vrot.slane %v1372_v56, 4  ;;  %v7216_v44 = vsel %vm370_vm0, %v7067_v43, 0  ;;  %v5138_v36 = vcombine.low %v1366_v31, %v1369_v60  ;;  %5966 = vmatprep.mubr.msk.bf16.mxu0 %vm321_vm1, %v6401_v18  ;;  %v1380_v24 = vsel %vm6716_vm7, %v5123_v21, %v1379_v6  ;;  %v6402_v43 = vld [vmem:[%s6532_s27 + $0x6c] sm:$0xff]   ;;  %v6403_v2 = vld [vmem:[%s6532_s27 + $0x78] sm:$0xff]   ;;  %v1302_v18 = vld [vmem:[%s6532_s27 + $0x48] sm:$0xe] }
  0x9b   : > { %v1001_v58 = vsel %vm6589_vm4, %v996_v26, %v1000_v55  ;;  %v1381_v17 = vrot.slane %v1379_v6, 4  ;;  %v5124_v32 = vrot.slane %v1299_v25, 9  ;;  %v1386_v30 = vrot.slane %v6873_v14, 5 }
  0x9c   : > { %v5104_v37 = vcombine.low %v991_v48, %v1001_v58  ;;  %v1376_v57 = vsel %vm6716_vm7, %v1374_v27, %v1375_v5  ;;  %v1389_v3 = vrot.slane %v6878_v15, 5  ;;  %v5125_v31 = vrot.slane %v1300_v35, 9 }
  0x9d   : > { %v5139_v55 = vcombine.low %v7212_v11, %v1376_v57  ;;  %v1383_v20 = vsel %vm6716_vm7, %v1381_v17, %v1382_v0  ;;  %v7239_v5 = vsel %vm6716_vm7, %v5124_v32, %v1386_v30  ;;  %v1388_v14 = vrot.slane %v1386_v30, 4 }
  0x9e   : > { %5813 = vmatmul.mubr.msk.bf16.gmra.mrb[28].mxu1 %vm321_vm1, %v5104_v37  ;;  %v5140_v56 = vcombine.low %v1380_v24, %v1383_v20  ;;  %v1393_v21 = vrot.slane %v6925_v9, 5  ;;  %v1396_v48 = vrot.slane %v6933_v7, 5  ;;  %v5126_v26 = vrot.slane %v1301_v34, 9  ;;  %v1304_v24 = vld [vmem:[%s6532_s27 + $0x60] sm:$0xe]  ;;  %v6404_v20 = vld [vmem:[%s6532_s27 + $0x84] sm:$0xff]  }
  0x9f   : > { %5818 = vmatprep.mubr.msk.bf16.mxu1 %vm321_vm1, %v5138_v36  ;;  %v1400_v15 = vrot.slane %v6949_v41, 5  ;;  %v1403_v6 = vrot.slane %v6952_v23, 5  ;;  %v7248_v0 = vsel %vm6716_vm7, %v1388_v14, %v1389_v3  ;;  %v5127_v9 = vrot.slane %v1302_v18, 9 }
  0xa0   : > { %v7252_v25 = vsel %vm6716_vm7, %v5125_v31, %v1393_v21  ;;  %v1395_v60 = vrot.slane %v1393_v21, 4  ;;  %v5141_v7 = vcombine.low %v7239_v5, %v7248_v0  ;;  %v1407_v11 = vrot.slane %v6974_v16, 5 }
  0xa1   : > { %v7258_v41 = vsel %vm6716_vm7, %v5126_v26, %v1400_v15  ;;  %v1402_v23 = vrot.slane %v1400_v15, 4  ;;  %5967 = vmatmul.mubr.msk.bf16.gmra.mrb[12].mxu0 %vm321_vm1, %v6402_v43  ;;  %v1410_v35 = vrot.slane %v6979_v19, 5  ;;  %v5128_v58 = vrot.slane %v1303_v50, 9  ;;  %v1305_v43 = vld [vmem:[%s6532_s27 + $0x6c] sm:$0xe] }
  0xa2   : > { %v7264_v27 = vsel %vm6716_vm7, %v1395_v60, %v1396_v48  ;;  %v1414_v36 = vrot.slane %v6994_v39, 5  ;;  %5970 = vmatprep.mubr.msk.bf16.mxu0 %vm321_vm1, %v6403_v2  ;;  %v7278_v37 = vsel %vm6716_vm7, %v5127_v9, %v1407_v11  ;;  %v1409_v57 = vrot.slane %v1407_v11, 4  ;;  %v1306_v19 = vld [vmem:[%s6532_s27 + $0x78] sm:$0xe]  ;;  %v1307_v48 = vld [vmem:[%s6532_s27 + $0x84] sm:$0xe] }
  0xa3   : > { %v5142_v17 = vcombine.low %v7252_v25, %v7264_v27  ;;  %v7274_v16 = vsel %vm6716_vm7, %v1402_v23, %v1403_v6  ;;  %v1417_v34 = vrot.slane %v7001_v10, 5  ;;  %v5129_v2 = vrot.slane %v1304_v24, 9  ;;  %v5446_v6 = vld [vmem:[%s6532_s27 + $0x18] sm:$0xf]  ;;  %v7322_v9 = vld [vmem:[%s6532_s27 + $0x1c] sm:$0xf] }
  0xa4   : > { %v5143_v39 = vcombine.low %v7258_v41, %v7274_v16  ;;  %v7286_v32 = vsel %vm6716_vm7, %v5128_v58, %v1414_v36  ;;  %v1416_v30 = vrot.slane %v1414_v36, 4  ;;  %v7292_v3 = vsel %vm6716_vm7, %v1409_v57, %v1410_v35  ;;  %v6428_v23 = vld [vmem:[%s8200_s1 + $0x8] sm:$0x3]  ;;  %v7335_v36 = vld [vmem:[%s6532_s27 + $0x20] sm:$0x1] }
  0xa5   : > { %v1421_v31 = vrot.slane %v7023_v40, 5  ;;  %v1424_v18 = vrot.slane %v7032_v22, 5  ;;  %v5144_v50 = vcombine.low %v7278_v37, %v7292_v3  ;;  %v5130_v10 = vrot.slane %v1305_v43, 9  ;;  %v6405_v40 = vld [vmem:[%s6532_s27 + $0x90] sm:$0xff]   ;;  %v5449_v43 = vld [vmem:[%s6532_s27 + $0x24] sm:$0xf] }
  0xa6   : > { %5819 = vmatmul.mubr.msk.bf16.vlgmr.msra.gmra.mrb[0].mxu1 %vm321_vm1, %v5139_v55  ;;  %v7301_v14 = vsel %vm6716_vm7, %v1416_v30, %v1417_v34  ;;  %v1428_v21 = vrot.slane %v7036_v62, 5  ;;  %v1431_v15 = vrot.slane %v7041_v13, 5  ;;  %v1435_v60 = vrot.slane %v7074_v33, 5 }
  0xa7   : > { %5822 = vmatprep.mubr.msk.bf16.mxu1 %vm321_vm1, %v5140_v56  ;;  %5851 = vmatpush3.bf16.msra.mxu1 %v7216_v44  ;;  %v5145_v22 = vcombine.low %v7286_v32, %v7301_v14  ;;  %v7312_v55 = vsel %vm6716_vm7, %v5129_v2, %v1421_v31  ;;  %v1423_v26 = vrot.slane %v1421_v31, 4  ;;  %v5131_v44 = vrot.slane %v1306_v19, 9 }
  0xa8   : > { %v7318_v62 = vsel %vm6716_vm7, %v5130_v10, %v1428_v21  ;;  %v1430_v56 = vrot.slane %v1428_v21, 4  ;;  %6349 = vmatprep.subr.msk.bf16.mxu1 %vm370_vm0, %v6428_v23  ;;  %v1438_v11 = vrot.slane %v7077_v61, 5  ;;  %v5132_v35 = vrot.slane %v1307_v48, 9  ;;  %v6407_v23 = vld [vmem:[%s6532_s27 + $0xa8] sm:$0xff]  }
  0xa9   : > { %v7330_v13 = vsel %vm6716_vm7, %v1423_v26, %v1424_v18  ;;  %v1442_v58 = vrot.slane %v7087_v29, 5  ;;  %5971 = vmatmul.mubr.msk.bf16.gmra.mrb[16].mxu0 %vm321_vm1, %v6404_v20  ;;  %v7346_v57 = vsel %vm6716_vm7, %v5131_v44, %v1435_v60  ;;  %v1437_v61 = vrot.slane %v1435_v60, 4  ;;  %v7374_v26 = vld [vmem:[%s6532_s27 + $0x2c] sm:$0x1] }
  0xaa   : > { %v5146_v33 = vcombine.low %v7312_v55, %v7330_v13  ;;  %v7342_v24 = vsel %vm6716_vm7, %v1430_v56, %v1431_v15  ;;  %5974 = vmatprep.mubr.msk.bf16.mxu0 %vm321_vm1, %v6405_v40  ;;  %v1445_v34 = vrot.slane %v7099_v45, 5  ;;  %v3738_v2 = vshrl.u32 %v5446_v6, 16  ;;  %v7371_v40 = vld [vmem:[%s6532_s27 + $0x28] sm:$0xf]  ;;  %v6406_v15 = vld [vmem:[%s6532_s27 + $0x9c] sm:$0xff]  }
  0xab   : > { %v5147_v29 = vcombine.low %v7318_v62, %v7342_v24  ;;  %v7354_v19 = vsel %vm6716_vm7, %v5132_v35, %v1442_v58  ;;  %v1444_v30 = vrot.slane %v1442_v58, 4  ;;  %v7359_v20 = vsel %vm6716_vm7, %v1437_v61, %v1438_v11  ;;  %v7491_v55 = vld [vmem:[%s6532_s27 + $0x50] sm:$0x1] }
  0xac   : > { %v3741_v31 = vshll.u32 %v5446_v6, 16  ;;  %v3747_v18 = vshll.u32 %v7322_v9, 16  ;;  %v5148_v10 = vcombine.low %v7346_v57, %v7359_v20  ;;  %v3751_v48 = vshrl.u32 %v7322_v9, 16 }
  0xad   : > { %v7366_v21 = vsel %vm6716_vm7, %v1444_v30, %v1445_v34  ;;  %v3757_v45 = vshll.u32 %v7335_v36, 16  ;;  %v3740_v56 = vrot.slane %v3738_v2, 4  ;;  %v3762_v5 = vshrl.u32 %v5449_v43, 16  ;;  %v1308_v34 = vld [vmem:[%s6532_s27 + $0x90] sm:$0xe] }
  0xae   : > { %5823 = vmatmul.mubr.msk.bf16.gmra.mrb[4].mxu1 %vm321_vm1, %v5141_v7  ;;  %v5149_v6 = vcombine.low %v7354_v19, %v7366_v21  ;;  %v3743_v44 = vrot.slane %v3741_v31, 5  ;;  %v3749_v60 = vrot.slane %v3747_v18, 5  ;;  %v3753_v11 = vrot.slane %v3751_v48, 4 }
  0xaf   : > { %5826 = vmatprep.mubr.msk.bf16.mxu1 %vm321_vm1, %v5142_v17  ;;  %v3759_v35 = vrot.slane %v3757_v45, 5  ;;  %v3765_v0 = vshll.u32 %v5449_v43, 16  ;;  %v3771_v58 = vshll.u32 %v7371_v40, 16  ;;  %v3775_v61 = vshrl.u32 %v7371_v40, 16  ;;  %v1309_v17 = vld [vmem:[%s6532_s27 + $0x9c] sm:$0xe] }
  0xb0   : > { %v3744_v7 = vor.u32 %v3743_v44, %v3740_v56  ;;  %v3781_v30 = vshll.u32 %v7374_v26, 16  ;;  %v3754_v2 = vor.u32 %v3753_v11, %v3749_v60  ;;  %v3764_v31 = vrot.slane %v3762_v5, 4  ;;  %v5452_v56 = vld [vmem:[%s6532_s27 + $0x30] sm:$0xf] }
  0xb1   : > { %v3767_v25 = vrot.slane %v3765_v0, 5  ;;  %v7394_v27 = vsel %vm370_vm0, %v7168_v54, 0  ;;  %5975 = vmatmul.mubr.msk.bf16.gmra.mrb[20].mxu0 %vm321_vm1, %v6406_v15  ;;  %v3773_v18 = vrot.slane %v3771_v58, 5  ;;  %v3777_v48 = vrot.slane %v3775_v61, 4  ;;  %v6408_v58 = vld [vmem:[%s6532_s27 + $0xb4] sm:$0xff]  }
  0xb2   : > { %v3745_v43 = vrot.slane %v3744_v7, 4  ;;  %v3783_v45 = vrot.slane %v3781_v30, 5  ;;  %5978 = vmatprep.mubr.msk.bf16.mxu0 %vm321_vm1, %v6407_v23  ;;  %v3755_v44 = vrot.slane %v3754_v2, 4  ;;  %v5133_v5 = vrot.slane %v1308_v34, 9  ;;  %v7412_v34 = vld [vmem:[%s6532_s27 + $0x34] sm:$0xf] }
  0xb3   : > { %v3768_v11 = vor.u32 %v3767_v25, %v3764_v31  ;;  %v1449_v0 = vrot.slane %v7106_v49, 5  ;;  %v3778_v53 = vor.u32 %v3777_v48, %v3773_v18  ;;  %v1452_v15 = vrot.slane %v7112_v59, 5  ;;  %v6409_v59 = vld [vmem:[%s6532_s27 + $0xc0] sm:$0xff]   ;;  %v7424_v25 = vld [vmem:[%s6532_s27 + $0x38] sm:$0x1] }
  0xb4   : > { %v3750_v54 = vsel %vm6589_vm4, %v3745_v43, %v3749_v60  ;;  %v5134_v7 = vrot.slane %v1309_v17, 9  ;;  %v3760_v61 = vsel %vm6589_vm4, %v3755_v44, %v3759_v35  ;;  %v1456_v2 = vrot.slane %v7119_v51, 5  ;;  %v5455_v17 = vld [vmem:[%s6532_s27 + $0x3c] sm:$0xf]  ;;  %v7438_v51 = vld [vmem:[%s6532_s27 + $0x40] sm:$0xf] }
  0xb5   : > { %v3769_v30 = vrot.slane %v3768_v11, 4  ;;  %v7409_v23 = vsel %vm6716_vm7, %v5133_v5, %v1449_v0  ;;  %v1451_v49 = vrot.slane %v1449_v0, 4  ;;  %v7419_v60 = vcombine.low %v3750_v54, %v3760_v61  ;;  %v7449_v43 = vld [vmem:[%s6532_s27 + $0x44] sm:$0x1] }
  0xb6   : > { %5827 = vmatmul.mubr.msk.bf16.gmra.mrb[8].mxu1 %vm321_vm1, %v5143_v39  ;;  %v3779_v35 = vrot.slane %v3778_v53, 4  ;;  %v1459_v31 = vrot.slane %v7130_v8, 5  ;;  %v3786_v39 = vshrl.u32 %v5452_v56, 16  ;;  %v3789_v53 = vshll.u32 %v5452_v56, 16 }
  0xb7   : > { %5830 = vmatprep.mubr.msk.bf16.mxu1 %vm321_vm1, %v5144_v50  ;;  %v3774_v41 = vsel %vm6589_vm4, %v3769_v30, %v3773_v18  ;;  %v7434_v16 = vsel %vm6716_vm7, %v1451_v49, %v1452_v15  ;;  %v7446_v3 = vsel %vm6716_vm7, %v5134_v7, %v1456_v2  ;;  %v1458_v50 = vrot.slane %v1456_v2, 4 }
  0xb8   : > { %v3784_v8 = vsel %vm6589_vm4, %v3779_v35, %v3783_v45  ;;  %v5150_v37 = vcombine.low %v7409_v23, %v7434_v16  ;;  %v3788_v48 = vrot.slane %v3786_v39, 4  ;;  %v3791_v56 = vrot.slane %v3789_v53, 5  ;;  %v6410_v53 = vld [vmem:[%s6532_s27 + $0xcc] sm:$0xff]  }
  0xb9   : > { %v7451_v18 = vcombine.low %v3774_v41, %v3784_v8  ;;  %v3795_v44 = vshll.u32 %v7412_v34, 16  ;;  %5979 = vmatmul.mubr.msk.bf16.gmra.mrb[24].mxu0 %vm321_vm1, %v6408_v58  ;;  %v7457_v45 = vsel %vm6716_vm7, %v1458_v50, %v1459_v31  ;;  %v3799_v11 = vshrl.u32 %v7412_v34, 16  ;;  %v1310_v58 = vld [vmem:[%s6532_s27 + $0xa8] sm:$0xe] }
  0xba   : > { %v3805_v5 = vshll.u32 %v7424_v25, 16  ;;  %v3810_v0 = vshrl.u32 %v5455_v17, 16  ;;  %5982 = vmatprep.mubr.msk.bf16.mxu0 %vm321_vm1, %v6409_v59  ;;  %v5151_v54 = vcombine.low %v7446_v3, %v7457_v45  ;;  %v3792_v15 = vor.u32 %v3791_v56, %v3788_v48  ;;  %v1311_v56 = vld [vmem:[%s6532_s27 + $0xb4] sm:$0xe] }
  0xbb   : > { %v3797_v7 = vrot.slane %v3795_v44, 5  ;;  %v3813_v61 = vshll.u32 %v5455_v17, 16  ;;  %v3801_v30 = vrot.slane %v3799_v11, 4  ;;  %v3819_v2 = vshll.u32 %v7438_v51, 16  ;;  %v5458_v11 = vld [vmem:[%s6532_s27 + $0x48] sm:$0xf] }
  0xbc   : > { %v3807_v49 = vrot.slane %v3805_v5, 5  ;;  %v3812_v35 = vrot.slane %v3810_v0, 4  ;;  %v3793_v31 = vrot.slane %v3792_v15, 4  ;;  %v3823_v39 = vshrl.u32 %v7438_v51, 16 }
  0xbd   : > { %v3815_v41 = vrot.slane %v3813_v61, 5  ;;  %v3829_v59 = vshll.u32 %v7449_v43, 16  ;;  %v3802_v17 = vor.u32 %v3801_v30, %v3797_v7  ;;  %v3821_v8 = vrot.slane %v3819_v2, 5  ;;  %v7488_v61 = vld [vmem:[%s6532_s27 + $0x4c] sm:$0xf] }
  0xbe   : > { %5831 = vmatmul.mubr.msk.bf16.gmra.mrb[12].mxu1 %vm321_vm1, %v5145_v22  ;;  %v5135_v50 = vrot.slane %v1310_v58, 9  ;;  %v1463_v48 = vrot.slane %v7141_v52, 5  ;;  %v3798_v44 = vsel %vm6589_vm4, %v3793_v31, %v3797_v7  ;;  %v3825_v14 = vrot.slane %v3823_v39, 4 }
  0xbf   : > { %5834 = vmatprep.mubr.msk.bf16.mxu1 %vm321_vm1, %v5146_v33  ;;  %v3816_v32 = vor.u32 %v3815_v41, %v3812_v35  ;;  %v3831_v22 = vrot.slane %v3829_v59, 5  ;;  %v3803_v5 = vrot.slane %v3802_v17, 4  ;;  %v1466_v52 = vrot.slane %v7152_v38, 5  ;;  %v7510_v59 = vld [vmem:[%s6532_s27 + $0x58] sm:$0xf] }
  0xc0   : > { %v7484_v0 = vsel %vm6716_vm7, %v5135_v50, %v1463_v48  ;;  %v1465_v15 = vrot.slane %v1463_v48, 4  ;;  %v3826_v33 = vor.u32 %v3825_v14, %v3821_v8  ;;  %v5136_v7 = vrot.slane %v1311_v56, 9  ;;  %v7517_v48 = vld [vmem:[%s6532_s27 + $0x5c] sm:$0x1] }
  0xc1   : > { %v3817_v13 = vrot.slane %v3816_v32, 4  ;;  %v1470_v58 = vrot.slane %v7161_v28, 5  ;;  %5983 = vmatmul.mubr.msk.bf16.gmra.mrb[28].mxu0 %vm321_vm1, %v6410_v53  ;;  %v3808_v30 = vsel %vm6589_vm4, %v3803_v5, %v3807_v49  ;;  %v1473_v35 = vrot.slane %v7174_v46, 5  ;;  %v5461_v49 = vld [vmem:[%s6532_s27 + $0x54] sm:$0xf] }
  0xc2   : > { %v7499_v38 = vsel %vm6716_vm7, %v1465_v15, %v1466_v52  ;;  %v3834_v2 = vshrl.u32 %v5458_v11, 16  ;;  %5988 = vmatprep.mubr.msk.bf16.mxu0 %vm321_vm1, %v7419_v60  ;;  %v5497_v31 = vcombine.low %v3798_v44, %v3808_v30  ;;  %v3827_v41 = vrot.slane %v3826_v33, 4  ;;  %v5464_v60 = vld [vmem:[%s6532_s27 + $0x60] sm:$0xf]  ;;  %v7544_v30 = vld [vmem:[%s6532_s27 + $0x68] sm:$0x1] }
  0xc3   : > { %v3822_v28 = vsel %vm6589_vm4, %v3817_v13, %v3821_v8  ;;  %v5152_v39 = vcombine.low %v7484_v0, %v7499_v38  ;;  %v7514_v53 = vsel %vm6716_vm7, %v5136_v7, %v1470_v58  ;;  %v1472_v46 = vrot.slane %v1470_v58, 4  ;;  %v7540_v13 = vld [vmem:[%s6532_s27 + $0x64] sm:$0xf] }
  0xc4   : > { %v3836_v17 = vrot.slane %v3834_v2, 4  ;;  %v3837_v50 = vshll.u32 %v5458_v11, 16  ;;  %v3832_v8 = vsel %vm6589_vm4, %v3827_v41, %v3831_v22  ;;  %v3843_v56 = vshll.u32 %v7488_v61, 16 }
  0xc5   : > { %v3847_v44 = vshrl.u32 %v7488_v61, 16  ;;  %v3853_v32 = vshll.u32 %v7491_v55, 16  ;;  %v5498_v14 = vcombine.low %v3822_v28, %v3832_v8  ;;  %v7531_v11 = vsel %vm6716_vm7, %v1472_v46, %v1473_v35 }
  0xc6   : > { %5835 = vmatmul.mubr.msk.bf16.gmra.mrb[16].mxu1 %vm321_vm1, %v5147_v29  ;;  %v3839_v5 = vrot.slane %v3837_v50, 5  ;;  %v3858_v15 = vshrl.u32 %v5461_v49, 16  ;;  %v5153_v22 = vcombine.low %v7514_v53, %v7531_v11  ;;  %v3845_v52 = vrot.slane %v3843_v56, 5  ;;  %v7648_v11 = vld [vmem:[%s6532_s27 + $0xa4] sm:$0x1] }
  0xc7   : > { %5838 = vmatprep.mubr.msk.bf16.mxu1 %vm321_vm1, %v5148_v10  ;;  %v3849_v62 = vrot.slane %v3847_v44, 4  ;;  %v3855_v24 = vrot.slane %v3853_v32, 5  ;;  %v3861_v7 = vshll.u32 %v5461_v49, 16  ;;  %v3867_v58 = vshll.u32 %v7510_v59, 16 }
  0xc8   : > { %v3840_v29 = vor.u32 %v3839_v5, %v3836_v17  ;;  %v3860_v33 = vrot.slane %v3858_v15, 4  ;;  %v3871_v57 = vshrl.u32 %v7510_v59, 16  ;;  %v3877_v20 = vshll.u32 %v7517_v48, 16  ;;  %v5467_v5 = vld [vmem:[%s6532_s27 + $0x6c] sm:$0xf] }
  0xc9   : > { %v3850_v35 = vor.u32 %v3849_v62, %v3845_v52  ;;  %v3882_v10 = vshrl.u32 %v5464_v60, 16  ;;  %5989 = vmatmul.mubr.msk.bf16.vlgmr.msra.gmra.mrb[0].mxu0 %vm321_vm1, %v7451_v18  ;;  %v3863_v28 = vrot.slane %v3861_v7, 5  ;;  %v3869_v41 = vrot.slane %v3867_v58, 5  ;;  %v7561_v62 = vld [vmem:[%s6532_s27 + $0x70] sm:$0xf] }
  0xca   : > { %v3841_v2 = vrot.slane %v3840_v29, 4  ;;  %v3885_v46 = vshll.u32 %v5464_v60, 16  ;;  %6021 = vmatpush3.bf16.msra.mxu0 %v7394_v27  ;;  %5992 = vmatprep.mubr.msk.bf16.mxu0 %vm321_vm1, %v5497_v31  ;;  %v3873_v17 = vrot.slane %v3871_v57, 4  ;;  %v3879_v50 = vrot.slane %v3877_v20, 5  ;;  %v7572_v57 = vld [vmem:[%s6532_s27 + $0x74] sm:$0x1] }
  0xcb   : > { %v3851_v49 = vrot.slane %v3850_v35, 4  ;;  %v3884_v8 = vrot.slane %v3882_v10, 4  ;;  %v3864_v44 = vor.u32 %v3863_v28, %v3860_v33  ;;  %v3891_v18 = vshll.u32 %v7540_v13, 16 }
  0xcc   : > { %v3846_v56 = vsel %vm6589_vm4, %v3841_v2, %v3845_v52  ;;  %v3887_v32 = vrot.slane %v3885_v46, 5  ;;  %v3874_v15 = vor.u32 %v3873_v17, %v3869_v41  ;;  %v3895_v27 = vshrl.u32 %v7540_v13, 16  ;;  %v5470_v2 = vld [vmem:[%s6532_s27 + $0x78] sm:$0xf]  ;;  %v7582_v46 = vld [vmem:[%s6532_s27 + $0x7c] sm:$0xf] }
  0xcd   : > { %v3856_v60 = vsel %vm6589_vm4, %v3851_v49, %v3855_v24  ;;  %v3901_v31 = vshll.u32 %v7544_v30, 16  ;;  %v3865_v29 = vrot.slane %v3864_v44, 4  ;;  %v3893_v7 = vrot.slane %v3891_v18, 5 }
  0xce   : > { %5839 = vmatmul.mubr.msk.bf16.gmra.mrb[20].mxu1 %vm321_vm1, %v5149_v6  ;;  %v5499_v52 = vcombine.low %v3846_v56, %v3856_v60  ;;  %v3888_v33 = vor.u32 %v3887_v32, %v3884_v8  ;;  %v3875_v24 = vrot.slane %v3874_v15, 4  ;;  %v3897_v58 = vrot.slane %v3895_v27, 4  ;;  %v7590_v32 = vld [vmem:[%s6532_s27 + $0x80] sm:$0x1]  ;;  %v5473_v27 = vld [vmem:[%s6532_s27 + $0x84] sm:$0xf] }
  0xcf   : > { %5842 = vmatprep.mubr.msk.bf16.mxu1 %vm321_vm1, %v5150_v37  ;;  %v3903_v35 = vrot.slane %v3901_v31, 5  ;;  %v3906_v20 = vshrl.u32 %v5467_v5, 16  ;;  %v3870_v19 = vsel %vm6589_vm4, %v3865_v29, %v3869_v41  ;;  %v3909_v6 = vshll.u32 %v5467_v5, 16 }
  0xd0   : > { %v3889_v21 = vrot.slane %v3888_v33, 4  ;;  %v3915_v10 = vshll.u32 %v7561_v62, 16  ;;  %v3880_v23 = vsel %vm6589_vm4, %v3875_v24, %v3879_v50  ;;  %v3898_v16 = vor.u32 %v3897_v58, %v3893_v7 }
  0xd1   : > { %v3908_v37 = vrot.slane %v3906_v20, 4  ;;  %v3919_v28 = vshrl.u32 %v7561_v62, 16  ;;  %5993 = vmatmul.mubr.msk.bf16.gmra.mrb[4].mxu0 %vm321_vm1, %v5498_v14  ;;  %v5500_v49 = vcombine.low %v3870_v19, %v3880_v23  ;;  %v3911_v17 = vrot.slane %v3909_v6, 5 }
  0xd2   : > { %v3894_v41 = vsel %vm6589_vm4, %v3889_v21, %v3893_v7  ;;  %v3917_v8 = vrot.slane %v3915_v10, 5  ;;  %5996 = vmatprep.mubr.msk.bf16.mxu0 %vm321_vm1, %v5499_v52  ;;  %v3899_v56 = vrot.slane %v3898_v16, 4  ;;  %v3925_v44 = vshll.u32 %v7572_v57, 16  ;;  %v7598_v7 = vld [vmem:[%s6532_s27 + $0x88] sm:$0xf] }
  0xd3   : > { %v3921_v50 = vrot.slane %v3919_v28, 4  ;;  %v3930_v18 = vshrl.u32 %v5470_v2, 16  ;;  %v3912_v5 = vor.u32 %v3911_v17, %v3908_v37  ;;  %v3933_v60 = vshll.u32 %v5470_v2, 16  ;;  %v5476_v16 = vld [vmem:[%s6532_s27 + $0x90] sm:$0xf] }
  0xd4   : > { %v3939_v14 = vshll.u32 %v7582_v46, 16  ;;  %v3943_v15 = vshrl.u32 %v7582_v46, 16  ;;  %v3904_v31 = vsel %vm6589_vm4, %v3899_v56, %v3903_v35  ;;  %v3927_v52 = vrot.slane %v3925_v44, 5  ;;  %v7619_v28 = vld [vmem:[%s6532_s27 + $0x94] sm:$0xf] }
  0xd5   : > { %v3922_v29 = vor.u32 %v3921_v50, %v3917_v8  ;;  %v3932_v33 = vrot.slane %v3930_v18, 4  ;;  %v5501_v24 = vcombine.low %v3894_v41, %v3904_v31  ;;  %v3913_v58 = vrot.slane %v3912_v5, 4  ;;  %v6411_v50 = vld [vmem:[%s6532_s27 + $0xc] sm:$0xff]  }
  0xd6   : > { %5843 = vmatmul.mubr.msk.bf16.gmra.mrb[24].mxu1 %vm321_vm1, %v5151_v54  ;;  %v3935_v20 = vrot.slane %v3933_v60, 5  ;;  %v3941_v19 = vrot.slane %v3939_v14, 5  ;;  %v3945_v21 = vrot.slane %v3943_v15, 4  ;;  %v3949_v6 = vshll.u32 %v7590_v32, 16  ;;  %v7612_v54 = vld [vmem:[%s6532_s27 + $0x8c] sm:$0x1] }
  0xd7   : > { %5846 = vmatprep.mubr.msk.bf16.mxu1 %vm321_vm1, %v5152_v39  ;;  %v3923_v35 = vrot.slane %v3922_v29, 4  ;;  %v3954_v10 = vshrl.u32 %v5473_v27, 16  ;;  %v3918_v3 = vsel %vm6589_vm4, %v3913_v58, %v3917_v8  ;;  %v3957_v2 = vshll.u32 %v5473_v27, 16  ;;  %v5479_v29 = vld [vmem:[%s6532_s27 + $0x9c] sm:$0xf] }
  0xd8   : > { %v3936_v45 = vor.u32 %v3935_v20, %v3932_v33  ;;  %v3963_v23 = vshll.u32 %v7598_v7, 16  ;;  %v3946_v38 = vor.u32 %v3945_v21, %v3941_v19  ;;  %v3951_v39 = vrot.slane %v3949_v6, 5  ;;  %v7636_v20 = vld [vmem:[%s6532_s27 + $0xa0] sm:$0xf] }
  0xd9   : > { %v3928_v0 = vsel %vm6589_vm4, %v3923_v35, %v3927_v52  ;;  %v3956_v37 = vrot.slane %v3954_v10, 4  ;;  %5997 = vmatmul.mubr.msk.bf16.gmra.mrb[8].mxu0 %vm321_vm1, %v5500_v49  ;;  %v3959_v8 = vrot.slane %v3957_v2, 5  ;;  %v3967_v18 = vshrl.u32 %v7598_v7, 16  ;;  %v7629_v49 = vld [vmem:[%s6532_s27 + $0x98] sm:$0x1] }
  0xda   : > { %v5502_v41 = vcombine.low %v3918_v3, %v3928_v0  ;;  %v3937_v17 = vrot.slane %v3936_v45, 4  ;;  %v3965_v56 = vrot.slane %v3963_v23, 5  ;;  %6000 = vmatprep.mubr.msk.bf16.mxu0 %vm321_vm1, %v5501_v24  ;;  %v3947_v44 = vrot.slane %v3946_v38, 4  ;;  %v5482_v0 = vld [vmem:[%s6532_s27 + $0xa8] sm:$0xf] }
  0xdb   : > { %v3973_v5 = vshll.u32 %v7612_v54, 16  ;;  %v3978_v60 = vshrl.u32 %v5476_v16, 16  ;;  %v3960_v15 = vor.u32 %v3959_v8, %v3956_v37  ;;  %v3981_v27 = vshll.u32 %v5476_v16, 16  ;;  %v6412_v8 = vld [vmem:[%s6532_s27 + $0x18] sm:$0xff]  }
  0xdc   : > { %v3942_v14 = vsel %vm6589_vm4, %v3937_v17, %v3941_v19  ;;  %v3987_v31 = vshll.u32 %v7619_v28, 16  ;;  %v3952_v52 = vsel %vm6589_vm4, %v3947_v44, %v3951_v39  ;;  %v3969_v33 = vrot.slane %v3967_v18, 4 }
  0xdd   : > { %v3975_v24 = vrot.slane %v3973_v5, 5  ;;  %v3980_v58 = vrot.slane %v3978_v60, 4  ;;  %v5503_v19 = vcombine.low %v3942_v14, %v3952_v52  ;;  %v3961_v35 = vrot.slane %v3960_v15, 4  ;;  %v6413_v5 = vld [vmem:[%s6532_s27 + $0x24] sm:$0xff]  }
  0xde   : > { %5847 = vmatmul.mubr.msk.bf16.gmra.mrb[28].mxu1 %vm321_vm1, %v5153_v22  ;;  %v3983_v21 = vrot.slane %v3981_v27, 5  ;;  %v3989_v6 = vrot.slane %v3987_v31, 5  ;;  %v3970_v10 = vor.u32 %v3969_v33, %v3965_v56  ;;  %v3991_v3 = vshrl.u32 %v7619_v28, 16  ;;  %v7661_v27 = vld [vmem:[%s6532_s27 + $0xac] sm:$0xf] }
  0xdf   : > { %5852 = vmatprep.mubr.msk.bf16.mxu1 %vm321_vm1, %v6411_v50  ;;  %v3997_v45 = vshll.u32 %v7629_v49, 16  ;;  %v4002_v2 = vshrl.u32 %v5479_v29, 16  ;;  %v3966_v23 = vsel %vm6589_vm4, %v3961_v35, %v3965_v56  ;;  %v4005_v22 = vshll.u32 %v5479_v29, 16  ;;  %v5485_v35 = vld [vmem:[%s6532_s27 + $0xb4] sm:$0xf] }
  0xe0   : > { %v3984_v53 = vor.u32 %v3983_v21, %v3980_v58  ;;  %v4011_v16 = vshll.u32 %v7636_v20, 16  ;;  %v3971_v38 = vrot.slane %v3970_v10, 4  ;;  %v3993_v39 = vrot.slane %v3991_v3, 4  ;;  %v7666_v58 = vld [vmem:[%s6532_s27 + $0xb0] sm:$0x1] }
  0xe1   : > { %v3999_v37 = vrot.slane %v3997_v45, 5  ;;  %v4004_v17 = vrot.slane %v4002_v2, 4  ;;  %6001 = vmatmul.mubr.msk.bf16.gmra.mrb[12].mxu0 %vm321_vm1, %v5502_v41  ;;  %v4007_v56 = vrot.slane %v4005_v22, 5  ;;  %v4015_v18 = vshrl.u32 %v7636_v20, 16 }
  0xe2   : > { %v3985_v50 = vrot.slane %v3984_v53, 4  ;;  %v4013_v44 = vrot.slane %v4011_v16, 5  ;;  %6004 = vmatprep.mubr.msk.bf16.mxu0 %vm321_vm1, %v5503_v19  ;;  %v3976_v60 = vsel %vm6589_vm4, %v3971_v38, %v3975_v24  ;;  %v3994_v14 = vor.u32 %v3993_v39, %v3989_v6  ;;  %v7678_v16 = vld [vmem:[%s6532_s27 + $0xb8] sm:$0xf] }
  0xe3   : > { %v4021_v15 = vshll.u32 %v7648_v11, 16  ;;  %v4026_v31 = vshrl.u32 %v5482_v0, 16  ;;  %v5504_v41 = vcombine.low %v3966_v23, %v3976_v60  ;;  %v4008_v52 = vor.u32 %v4007_v56, %v4004_v17  ;;  %v6414_v60 = vld [vmem:[%s6532_s27 + $0x30] sm:$0xff]  }
  0xe4   : > { %v3990_v29 = vsel %vm6589_vm4, %v3985_v50, %v3989_v6  ;;  %v4017_v33 = vrot.slane %v4015_v18, 4  ;;  %v3995_v19 = vrot.slane %v3994_v14, 4  ;;  %v4029_v24 = vshll.u32 %v5482_v0, 16  ;;  %v7683_v50 = vld [vmem:[%s6532_s27 + $0xbc] sm:$0x1] }
  0xe5   : > { %v4023_v21 = vrot.slane %v4021_v15, 5  ;;  %v4028_v10 = vrot.slane %v4026_v31, 4  ;;  %v4009_v3 = vrot.slane %v4008_v52, 4  ;;  %v4035_v2 = vshll.u32 %v7661_v27, 16 }
  0xe6   : > { %5853 = vmatmul.mubr.msk.bf16.vlgmr.msra.gmra.mrb[0].mxu1 %vm321_vm1, %v6412_v8  ;;  %v4018_v45 = vor.u32 %v4017_v33, %v4013_v44  ;;  %v4039_v23 = vshrl.u32 %v7661_v27, 16  ;;  %v4000_v6 = vsel %vm6589_vm4, %v3995_v19, %v3999_v37  ;;  %v4031_v53 = vrot.slane %v4029_v24, 5  ;;  %v7696_v24 = vld [vmem:[%s6532_s27 + $0xc4] sm:$0xf] }
  0xe7   : > { %5856 = vmatprep.mubr.msk.bf16.mxu1 %vm321_vm1, %v6413_v5  ;;  %6055 = vmatpush3.bf16.msra.mxu1 %v6520_v4  ;;  %v4045_v22 = vshll.u32 %v7666_v58, 16  ;;  %v4050_v0 = vshrl.u32 %v5485_v35, 16  ;;  %v5505_v38 = vcombine.low %v3990_v29, %v4000_v6  ;;  %v4014_v39 = vsel %vm6589_vm4, %v4009_v3, %v4013_v44  ;;  %v5488_v5 = vld [vmem:[%s6532_s27 + $0xc0] sm:$0xf] }
  0xe8   : > { %v4019_v17 = vrot.slane %v4018_v45, 4  ;;  %v4037_v8 = vrot.slane %v4035_v2, 5  ;;  %v4032_v4 = vor.u32 %v4031_v53, %v4028_v10  ;;  %v4041_v56 = vrot.slane %v4039_v23, 4  ;;  %v6415_v29 = vld [vmem:[%s6532_s27 + $0x3c] sm:$0xff]  }
  0xe9   : > { %v4047_v18 = vrot.slane %v4045_v22, 5  ;;  %v4052_v37 = vrot.slane %v4050_v0, 4  ;;  %6005 = vmatmul.mubr.msk.bf16.gmra.mrb[16].mxu0 %vm321_vm1, %v5504_v41  ;;  %v4053_v15 = vshll.u32 %v5485_v35, 16  ;;  %v4059_v44 = vshll.u32 %v7678_v16, 16 }
  0xea   : > { %v4024_v14 = vsel %vm6589_vm4, %v4019_v17, %v4023_v21  ;;  %v4063_v31 = vshrl.u32 %v7678_v16, 16  ;;  %6008 = vmatprep.mubr.msk.bf16.mxu0 %vm321_vm1, %v5505_v38  ;;  %v4033_v33 = vrot.slane %v4032_v4, 4  ;;  %v4042_v19 = vor.u32 %v4041_v56, %v4037_v8  ;;  %v7699_v21 = vld [vmem:[%s6532_s27 + $0xc8] sm:$0x1]  ;;  %v5491_v17 = vld [vmem:[%s6532_s27 + $0xcc] sm:$0xf] }
  0xeb   : > { %v5506_v52 = vcombine.low %v4014_v39, %v4024_v14  ;;  %v4069_v10 = vshll.u32 %v7683_v50, 16  ;;  %v4055_v41 = vrot.slane %v4053_v15, 5  ;;  %v4061_v3 = vrot.slane %v4059_v44, 5  ;;  %v7712_v14 = vld [vmem:[%s6532_s27 + $0xd0] sm:$0xf] }
  0xec   : > { %v4065_v45 = vrot.slane %v4063_v31, 4  ;;  %v4074_v35 = vshrl.u32 %v5488_v5, 16  ;;  %v4038_v2 = vsel %vm6589_vm4, %v4033_v33, %v4037_v8  ;;  %v4043_v23 = vrot.slane %v4042_v19, 4 }
  0xed   : > { %v4071_v6 = vrot.slane %v4069_v10, 5  ;;  %v4077_v53 = vshll.u32 %v5488_v5, 16  ;;  %v4056_v22 = vor.u32 %v4055_v41, %v4052_v37  ;;  %v4083_v39 = vshll.u32 %v7696_v24, 16 }
  0xee   : > { %5857 = vmatmul.mubr.msk.bf16.gmra.mrb[4].mxu1 %vm321_vm1, %v6414_v60  ;;  %v4066_v0 = vor.u32 %v4065_v45, %v4061_v3  ;;  %v4076_v38 = vrot.slane %v4074_v35, 4  ;;  %v4048_v4 = vsel %vm6589_vm4, %v4043_v23, %v4047_v18  ;;  %v4087_v8 = vshrl.u32 %v7696_v24, 16  ;;  %v6416_v18 = vld [vmem:[%s6532_s27 + $0x48] sm:$0xff]   ;;  %v5527_v23 = vld [vmem:[%s6532_s27 + $0x18] sm:$0xe] }
  0xef   : > { %5860 = vmatprep.mubr.msk.bf16.mxu1 %vm321_vm1, %v6415_v29  ;;  %v4079_v56 = vrot.slane %v4077_v53, 5  ;;  %v4093_v5 = vshll.u32 %v7699_v21, 16  ;;  %v5507_v37 = vcombine.low %v4038_v2, %v4048_v4  ;;  %v4057_v60 = vrot.slane %v4056_v22, 4  ;;  %v7715_v29 = vld [vmem:[%s6532_s27 + $0xd4] sm:$0x1] }
  0xf0   : > { %v4067_v15 = vrot.slane %v4066_v0, 4  ;;  %v4085_v44 = vrot.slane %v4083_v39, 5  ;;  %v4089_v33 = vrot.slane %v4087_v8, 4  ;;  %v4098_v10 = vshrl.u32 %v5491_v17, 16  ;;  %v6417_v53 = vld [vmem:[%s6532_s27 + $0x54] sm:$0xff]  }
  0xf1   : > { %v4080_v31 = vor.u32 %v4079_v56, %v4076_v38  ;;  %v4095_v19 = vrot.slane %v4093_v5, 5  ;;  %6009 = vmatmul.mubr.msk.bf16.gmra.mrb[20].mxu0 %vm321_vm1, %v5506_v52  ;;  %v4062_v41 = vsel %vm6589_vm4, %v4057_v60, %v4061_v3  ;;  %v4101_v35 = vshll.u32 %v5491_v17, 16  ;;  %v5528_v8 = vld [vmem:[%s6532_s27 + $0x24] sm:$0xe] }
  0xf2   : > { %v4072_v45 = vsel %vm6589_vm4, %v4067_v15, %v4071_v6  ;;  %v4107_v2 = vshll.u32 %v7712_v14, 16  ;;  %6012 = vmatprep.mubr.msk.bf16.mxu0 %vm321_vm1, %v5507_v37  ;;  %v4090_v38 = vor.u32 %v4089_v33, %v4085_v44  ;;  %v4100_v39 = vrot.slane %v4098_v10, 4  ;;  %v5529_v10 = vld [vmem:[%s6532_s27 + $0x30] sm:$0xe] }
  0xf3   : > { %v5508_v22 = vcombine.low %v4062_v41, %v4072_v45  ;;  %v4081_v0 = vrot.slane %v4080_v31, 4  ;;  %v4103_v52 = vrot.slane %v4101_v35, 5  ;;  %v4111_v56 = vshrl.u32 %v7712_v14, 16 }
  0xf4   : > { %v4109_v4 = vrot.slane %v4107_v2, 5  ;;  %v4117_v3 = vshll.u32 %v7715_v29, 16  ;;  %v4091_v17 = vrot.slane %v4090_v38, 4  ;;  %v5543_v5 = vrot.slane %v5527_v23, 9 }
  0xf5   : > { %v4086_v6 = vsel %vm6589_vm4, %v4081_v0, %v4085_v44  ;;  %v4481_v60 = vrot.slane %v7322_v9, 5  ;;  %v4104_v37 = vor.u32 %v4103_v52, %v4100_v39  ;;  %v4113_v15 = vrot.slane %v4111_v56, 4  ;;  %v5530_v39 = vld [vmem:[%s6532_s27 + $0x3c] sm:$0xe] }
  0xf6   : > { %5861 = vmatmul.mubr.msk.bf16.gmra.mrb[8].mxu1 %vm321_vm1, %v6416_v18  ;;  %v4119_v31 = vrot.slane %v4117_v3, 5  ;;  %v4484_v33 = vrot.slane %v7335_v36, 5  ;;  %v4096_v41 = vsel %vm6589_vm4, %v4091_v17, %v4095_v19  ;;  %v5544_v9 = vrot.slane %v5528_v8, 9  ;;  %v6418_v3 = vld [vmem:[%s6532_s27 + $0x60] sm:$0xff]   ;;  %v5531_v8 = vld [vmem:[%s6532_s27 + $0x48] sm:$0xe] }
  0xf7   : > { %5864 = vmatprep.mubr.msk.bf16.mxu1 %vm321_vm1, %v6417_v53  ;;  %v4482_v44 = vsel %vm6716_vm7, %v5543_v5, %v4481_v60  ;;  %v4483_v45 = vrot.slane %v4481_v60, 4  ;;  %v5509_v18 = vcombine.low %v4086_v6, %v4096_v41  ;;  %v4105_v35 = vrot.slane %v4104_v37, 4  ;;  %v6419_v6 = vld [vmem:[%s6532_s27 + $0x6c] sm:$0xff]  }
  0xf8   : > { %v4114_v2 = vor.u32 %v4113_v15, %v4109_v4  ;;  %v4488_v23 = vrot.slane %v7371_v40, 5  ;;  %v8207_v36 = vshll.u32 %v6909_v12, 16  ;;  %v5545_v19 = vrot.slane %v5529_v10, 9  ;;  %v5532_v15 = vld [vmem:[%s6532_s27 + $0x54] sm:$0xe] }
  0xf9   : > { %v4485_v53 = vsel %vm6716_vm7, %v4483_v45, %v4484_v33  ;;  %v4495_v38 = vrot.slane %v7412_v34, 5  ;;  %v8208_v52 = vor.u32 %v6921_v1, %v6911_v63  ;;  %6013 = vmatmul.mubr.msk.bf16.gmra.mrb[24].mxu0 %vm321_vm1, %v5508_v22  ;;  %v4491_v12 = vrot.slane %v7374_v26, 5 }
  0xfa   : > { %v7744_v0 = vrot.slane %v8207_v36, 5  ;;  %v4115_v40 = vrot.slane %v4114_v2, 4  ;;  %6016 = vmatprep.mubr.msk.bf16.mxu0 %vm321_vm1, %v5509_v18  ;;  %v4110_v34 = vsel %vm6589_vm4, %v4105_v35, %v4109_v4  ;;  %v5560_v17 = vcombine.low %v4482_v44, %v4485_v53  ;;  %v5259_v44 = vld [vmem:[%s6532_s27 + $0x6c] sm:$0xf] }
  0xfb   : > { %v7753_v56 = vrot.slane %v8208_v52, 4  ;;  %v7765_v1 = vsel %vm6716_vm7, %v5544_v9, %v4488_v23  ;;  %v4490_v5 = vrot.slane %v4488_v23, 4  ;;  %v5546_v60 = vrot.slane %v5530_v39, 9  ;;  %v6420_v39 = vld [vmem:[%s6532_s27 + $0x78] sm:$0xff]  }
  0xfc   : > { %v4120_v22 = vsel %vm6589_vm4, %v4115_v40, %v4119_v31  ;;  %v4502_v26 = vrot.slane %v7438_v51, 5  ;;  %v4505_v37 = vrot.slane %v7449_v43, 5  ;;  %v7774_v33 = vsel %vm6716_vm7, %v5545_v19, %v4495_v38  ;;  %v5262_v19 = vld [vmem:[%s6532_s27 + $0x78] sm:$0xf]  ;;  %v6429_v40 = vld [vmem:[%s6532_s27 + $0x70] sm:$0xf] }
  0xfd   : > { %v4497_v4 = vrot.slane %v4495_v38, 4  ;;  %v4498_v10 = vrot.slane %v7424_v25, 5  ;;  %v5547_v41 = vrot.slane %v5531_v8, 9  ;;  %v5510_v45 = vcombine.low %v4110_v34, %v4120_v22  ;;  %v6421_v8 = vld [vmem:[%s6532_s27 + $0x84] sm:$0xff]  }
  0xfe   : > { %5865 = vmatmul.mubr.msk.bf16.gmra.mrb[12].mxu1 %vm321_vm1, %v6418_v3  ;;  %v4492_v31 = vsel %vm6716_vm7, %v4490_v5, %v4491_v12  ;;  %v7783_v51 = vsel %vm6716_vm7, %v5546_v60, %v4502_v26  ;;  %v4504_v43 = vrot.slane %v4502_v26, 4  ;;  %v4509_v9 = vrot.slane %v7488_v61, 5  ;;  %v5533_v60 = vld [vmem:[%s6532_s27 + $0x60] sm:$0xe] }
  0xff   : > { %5868 = vmatprep.mubr.msk.bf16.mxu1 %vm321_vm1, %v6419_v6  ;;  %v4512_v25 = vrot.slane %v7491_v55, 5  ;;  %v5548_v18 = vrot.slane %v5532_v15, 9  ;;  %v4516_v35 = vrot.slane %v7510_v59, 5  ;;  %v4519_v23 = vrot.slane %v7517_v48, 5 }
 0x100   : > { %v7791_v2 = vsel %vm6716_vm7, %v4504_v43, %v4505_v37  ;;  %v2372_v36 = vshrl.u32 %v5259_v44, 16  ;;  %v2375_v53 = vshll.u32 %v5259_v44, 16  ;;  %v4499_v38 = vsel %vm6716_vm7, %v4497_v4, %v4498_v10 }
 0x101   : > { %v5563_v61 = vcombine.low %v7783_v51, %v7791_v2  ;;  %v7801_v55 = vsel %vm6716_vm7, %v5547_v41, %v4509_v9  ;;  %v4511_v59 = vrot.slane %v4509_v9, 4  ;;  %6017 = vmatmul.mubr.msk.bf16.gmra.mrb[28].mxu0 %vm321_vm1, %v5510_v45  ;;  %v7807_v48 = vsel %vm6716_vm7, %v5548_v18, %v4516_v35  ;;  %v6430_v45 = vld [vmem:[%s6532_s27 + $0x74] sm:$0x1] }
 0x102   : > { %v4518_v52 = vrot.slane %v4516_v35, 4  ;;  %v2374_v3 = vrot.slane %v2372_v36, 4  ;;  %v2381_v12 = vshll.u32 %v6429_v40, 16  ;;  %6022 = vmatprep.mubr.msk.bf16.mxu0 %vm321_vm1, %v5560_v17  ;;  %v2377_v34 = vrot.slane %v2375_v53, 5  ;;  %v5534_v17 = vld [vmem:[%s6532_s27 + $0x6c] sm:$0xe] }
 0x103   : > { %v7814_v6 = vsel %vm6716_vm7, %v4511_v59, %v4512_v25  ;;  %v2385_v5 = vshrl.u32 %v6429_v40, 16  ;;  %v2396_v22 = vshrl.u32 %v5262_v19, 16  ;;  %v5561_v26 = vcombine.low %v7765_v1, %v4492_v31  ;;  %v5265_v25 = vld [vmem:[%s6532_s27 + $0x84] sm:$0xf] }
 0x104   : > { %v5562_v37 = vcombine.low %v7774_v33, %v4499_v38  ;;  %v5564_v15 = vcombine.low %v7801_v55, %v7814_v6  ;;  %v7823_v4 = vsel %vm6716_vm7, %v4518_v52, %v4519_v23  ;;  %v7828_v41 = vrot.slane %v2381_v12, 5 }
 0x105   : > { %v5565_v10 = vcombine.low %v7807_v48, %v7823_v4  ;;  %v2387_v44 = vrot.slane %v2385_v5, 4  ;;  %v2391_v43 = vshll.u32 %v6430_v45, 16  ;;  %v2398_v1 = vrot.slane %v2396_v22, 4  ;;  %v5268_v22 = vld [vmem:[%s6532_s27 + $0x90] sm:$0xf] }
 0x106   : > { %5869 = vmatmul.mubr.msk.bf16.gmra.mrb[16].mxu1 %vm321_vm1, %v6420_v39  ;;  %v2399_v33 = vshll.u32 %v5262_v19, 16  ;;  %v2418_v31 = vsel %vm6589_vm4, %v7753_v56, %v7744_v0  ;;  %v5549_v9 = vrot.slane %v5533_v60, 9  ;;  %v2378_v18 = vor.u32 %v2377_v34, %v2374_v3  ;;  %v6423_v3 = vld [vmem:[%s6532_s27 + $0x9c] sm:$0xff]   ;;  %v6431_v34 = vld [vmem:[%s6532_s27 + $0x88] sm:$0xf] }
 0x107   : > { %5872 = vmatprep.mubr.msk.bf16.mxu1 %vm321_vm1, %v6421_v8  ;;  %v4523_v35 = vrot.slane %v7540_v13, 5  ;;  %v4526_v23 = vrot.slane %v7544_v30, 5  ;;  %v5550_v36 = vrot.slane %v5534_v17, 9  ;;  %v4530_v19 = vrot.slane %v7561_v62, 5  ;;  %v6422_v13 = vld [vmem:[%s6532_s27 + $0x90] sm:$0xff]  }
 0x108   : > { %v2401_v53 = vrot.slane %v2399_v33, 5  ;;  %v4533_v38 = vrot.slane %v7572_v57, 5  ;;  %v2388_v59 = vor.u32 %v2387_v44, %v7828_v41  ;;  %v2420_v39 = vshrl.u32 %v5265_v25, 16 }
 0x109   : > { %v7845_v0 = vsel %vm6716_vm7, %v5549_v9, %v4523_v35  ;;  %v4525_v56 = vrot.slane %v4523_v35, 4  ;;  %6023 = vmatmul.mubr.msk.bf16.vlgmr.msra.gmra.mrb[0].mxu0 %vm321_vm1, %v5561_v26  ;;  %v7851_v52 = vsel %vm6716_vm7, %v5550_v36, %v4530_v19  ;;  %v4532_v62 = vrot.slane %v4530_v19, 4  ;;  %v6432_v36 = vld [vmem:[%s6532_s27 + $0x8c] sm:$0x1]  ;;  %v6433_v19 = vld [vmem:[%s6532_s27 + $0x94] sm:$0xf] }
 0x10a   : > { %v2402_v30 = vor.u32 %v2401_v53, %v2398_v1  ;;  %v2423_v57 = vshll.u32 %v5265_v25, 16  ;;  %6026 = vmatprep.mubr.msk.bf16.mxu0 %vm321_vm1, %v5562_v37  ;;  %v7855_v40 = vrot.slane %v2378_v18, 4  ;;  %v7857_v12 = vrot.slane %v2391_v43, 5 }
 0x10b   : > { %v7861_v8 = vsel %vm6716_vm7, %v4525_v56, %v4526_v23  ;;  %v2429_v5 = vshll.u32 %v6431_v34, 16  ;;  %v7869_v17 = vsel %vm6716_vm7, %v4532_v62, %v4533_v38  ;;  %v2422_v37 = vrot.slane %v2420_v39, 4  ;;  %v5535_v56 = vld [vmem:[%s6532_s27 + $0x78] sm:$0xe] }
 0x10c   : > { %v2403_v60 = vrot.slane %v2402_v30, 4  ;;  %v5566_v26 = vcombine.low %v7845_v0, %v7861_v8  ;;  %v5567_v44 = vcombine.low %v7851_v52, %v7869_v17  ;;  %v2425_v45 = vrot.slane %v2423_v57, 5  ;;  %v6434_v57 = vld [vmem:[%s6532_s27 + $0x98] sm:$0x1]  ;;  %v6437_v0 = vld [vmem:[%s6532_s27 + $0xa4] sm:$0x1] }
 0x10d   : > { %v7873_v43 = vrot.slane %v2429_v5, 5  ;;  %v2433_v1 = vshrl.u32 %v6431_v34, 16  ;;  %v2389_v33 = vrot.slane %v2388_v59, 4  ;;  %v2444_v25 = vshrl.u32 %v5268_v22, 16 }
 0x10e   : > { %5873 = vmatmul.mubr.msk.bf16.gmra.mrb[20].mxu1 %vm321_vm1, %v6422_v13  ;;  %v2408_v9 = vsel %vm6589_vm4, %v2403_v60, %v6911_v63  ;;  %v2447_v18 = vshll.u32 %v5268_v22, 16  ;;  %v2439_v53 = vshll.u32 %v6432_v36, 16  ;;  %v2453_v38 = vshll.u32 %v6433_v19, 16 }
 0x10f   : > { %5876 = vmatprep.mubr.msk.bf16.mxu1 %vm321_vm1, %v6423_v3  ;;  %v7880_v35 = vcombine.low %v2408_v9, %v2418_v31  ;;  %v2435_v23 = vrot.slane %v2433_v1, 4  ;;  %v2426_v59 = vor.u32 %v2425_v45, %v2422_v37  ;;  %v2446_v39 = vrot.slane %v2444_v25, 4  ;;  %v6424_v31 = vld [vmem:[%s6532_s27 + $0xa8] sm:$0xff]   ;;  %v5536_v37 = vld [vmem:[%s6532_s27 + $0x84] sm:$0xe]  ;;  %v6425_v45 = vld [vmem:[%s6532_s27 + $0xb4] sm:$0xff]  }
 0x110   : > { %v2449_v13 = vrot.slane %v2447_v18, 5  ;;  %v2457_v63 = vshrl.u32 %v6433_v19, 16  ;;  %v7886_v62 = vrot.slane %v2453_v38, 5  ;;  %v2463_v3 = vshll.u32 %v6434_v57, 16 }
 0x111   : > { %v2436_v30 = vor.u32 %v2435_v23, %v7873_v43  ;;  %6027 = vmatmul.mubr.msk.bf16.gmra.mrb[4].mxu0 %vm321_vm1, %v5563_v61  ;;  %v5551_v22 = vrot.slane %v5535_v56, 9  ;;  %v4537_v60 = vrot.slane %v7582_v46, 5  ;;  %v2384_v51 = vsel %vm6589_vm4, %v7855_v40, %v7828_v41  ;;  %v6435_v56 = vld [vmem:[%s6532_s27 + $0xa0] sm:$0xf] }
 0x112   : > { %v2450_v34 = vor.u32 %v2449_v13, %v2446_v39  ;;  %v2459_v5 = vrot.slane %v2457_v63, 4  ;;  %6030 = vmatprep.mubr.msk.bf16.mxu0 %vm321_vm1, %v5564_v15  ;;  %v2394_v2 = vsel %vm6589_vm4, %v2389_v33, %v7857_v12  ;;  %v2441_v61 = vrot.slane %v2439_v53, 5  ;;  %v5271_v15 = vld [vmem:[%s6532_s27 + $0x9c] sm:$0xf]  ;;  %v5274_v13 = vld [vmem:[%s6532_s27 + $0xa8] sm:$0xf] }
 0x113   : > { %v4540_v1 = vrot.slane %v7590_v32, 5  ;;  %v2427_v46 = vrot.slane %v2426_v59, 4  ;;  %v7912_v55 = vsel %vm6716_vm7, %v5551_v22, %v4537_v60  ;;  %v4539_v6 = vrot.slane %v4537_v60, 4 }
 0x114   : > { %v2460_v9 = vor.u32 %v2459_v5, %v7886_v62  ;;  %v2437_v25 = vrot.slane %v2436_v30, 4  ;;  %v5552_v18 = vrot.slane %v5536_v37, 9  ;;  %v4544_v41 = vrot.slane %v7598_v7, 5  ;;  %v5537_v37 = vld [vmem:[%s6532_s27 + $0x90] sm:$0xe] }
 0x115   : > { %v4547_v40 = vrot.slane %v7612_v54, 5  ;;  %v2451_v32 = vrot.slane %v2450_v34, 4  ;;  %v2465_v33 = vrot.slane %v2463_v3, 5  ;;  %v7920_v23 = vsel %vm6716_vm7, %v4539_v6, %v4540_v1  ;;  %v5538_v1 = vld [vmem:[%s6532_s27 + $0x9c] sm:$0xe] }
 0x116   : > { %5877 = vmatmul.mubr.msk.bf16.gmra.mrb[24].mxu1 %vm321_vm1, %v6424_v31  ;;  %v2461_v12 = vrot.slane %v2460_v9, 4  ;;  %v5568_v36 = vcombine.low %v7912_v55, %v7920_v23  ;;  %v7927_v7 = vsel %vm6716_vm7, %v5552_v18, %v4544_v41  ;;  %v4546_v54 = vrot.slane %v4544_v41, 4  ;;  %v6426_v31 = vld [vmem:[%s6532_s27 + $0xc0] sm:$0xff]  }
 0x117   : > { %5880 = vmatprep.mubr.msk.bf16.mxu1 %vm321_vm1, %v6425_v45  ;;  %v2468_v53 = vshrl.u32 %v5271_v15, 16  ;;  %v5292_v19 = vcombine.low %v2384_v51, %v2394_v2  ;;  %v2471_v38 = vshll.u32 %v5271_v15, 16  ;;  %v2477_v59 = vshll.u32 %v6435_v56, 16  ;;  %v6436_v51 = vld [vmem:[%s6532_s27 + $0xac] sm:$0xf] }
 0x118   : > { %v2481_v39 = vshrl.u32 %v6435_v56, 16  ;;  %v2432_v63 = vsel %vm6589_vm4, %v2427_v46, %v7873_v43  ;;  %v2442_v30 = vsel %vm6589_vm4, %v2437_v25, %v2441_v61  ;;  %v7938_v57 = vsel %vm6716_vm7, %v4546_v54, %v4547_v40  ;;  %v5277_v54 = vld [vmem:[%s6532_s27 + $0xb4] sm:$0xf] }
 0x119   : > { %v2470_v3 = vrot.slane %v2468_v53, 4  ;;  %6031 = vmatmul.mubr.msk.bf16.gmra.mrb[8].mxu0 %vm321_vm1, %v5565_v10  ;;  %v5569_v34 = vcombine.low %v7927_v7, %v7938_v57  ;;  %v2473_v43 = vrot.slane %v2471_v38, 5  ;;  %v7947_v5 = vrot.slane %v2477_v59, 5 }
 0x11a   : > { %v2483_v22 = vrot.slane %v2481_v39, 4  ;;  %6034 = vmatprep.mubr.msk.bf16.mxu0 %vm321_vm1, %v5566_v26  ;;  %v2456_v48 = vsel %vm6589_vm4, %v2451_v32, %v7886_v62  ;;  %v2466_v4 = vsel %vm6589_vm4, %v2461_v12, %v2465_v33  ;;  %v2492_v10 = vshrl.u32 %v5274_v13, 16  ;;  %v6438_v26 = vld [vmem:[%s6532_s27 + $0xb0] sm:$0x1] }
 0x11b   : > { %v2495_v60 = vshll.u32 %v5274_v13, 16  ;;  %v2474_v45 = vor.u32 %v2473_v43, %v2470_v3  ;;  %v2501_v2 = vshll.u32 %v6436_v51, 16  ;;  %v2505_v61 = vshrl.u32 %v6436_v51, 16 }
 0x11c   : > { %v2484_v46 = vor.u32 %v2483_v22, %v7947_v5  ;;  %v2487_v8 = vshll.u32 %v6437_v0, 16  ;;  %v2511_v9 = vshll.u32 %v6438_v26, 16  ;;  %v5294_v62 = vcombine.low %v2432_v63, %v2442_v30 }
 0x11d   : > { %v7965_v55 = vcombine.low %v2456_v48, %v2466_v4  ;;  %v2494_v6 = vrot.slane %v2492_v10, 4  ;;  %v5553_v15 = vrot.slane %v5537_v37, 9  ;;  %v2497_v25 = vrot.slane %v2495_v60, 5  ;;  %v6440_v10 = vld [vmem:[%s6532_s27 + $0xbc] sm:$0x1] }
 0x11e   : > { %5881 = vmatmul.mubr.msk.bf16.gmra.mrb[28].mxu1 %vm321_vm1, %v6426_v31  ;;  %v4551_v18 = vrot.slane %v7619_v28, 5  ;;  %v4554_v41 = vrot.slane %v7629_v49, 5  ;;  %v5554_v40 = vrot.slane %v5538_v1, 9  ;;  %v2475_v32 = vrot.slane %v2474_v45, 4 }
 0x11f   : > { %5902 = vmatprep.mubr.msk.bf16.mxu1 %vm321_vm1, %v5292_v19  ;;  %v7970_v12 = vrot.slane %v2501_v2, 5  ;;  %v2507_v33 = vrot.slane %v2505_v61, 4  ;;  %v4558_v23 = vrot.slane %v7636_v20, 5  ;;  %v2485_v53 = vrot.slane %v2484_v46, 4  ;;  %v6441_v2 = vld [vmem:[%s6532_s27 + $0xc4] sm:$0xf] }
 0x120   : > { %v2489_v38 = vrot.slane %v2487_v8, 5  ;;  %v7974_v56 = vrot.slane %v2511_v9, 5  ;;  %v4553_v19 = vrot.slane %v4551_v18, 4  ;;  %v4552_v28 = vsel %vm6716_vm7, %v5553_v15, %v4551_v18  ;;  %v5539_v46 = vld [vmem:[%s6532_s27 + $0xa8] sm:$0xe] }
 0x121   : > { %6035 = vmatmul.mubr.msk.bf16.gmra.mrb[12].mxu0 %vm321_vm1, %v5567_v44  ;;  %v7984_v49 = vsel %vm6716_vm7, %v5554_v40, %v4558_v23  ;;  %v4560_v20 = vrot.slane %v4558_v23, 4  ;;  %v4561_v59 = vrot.slane %v7648_v11, 5  ;;  %v2498_v39 = vor.u32 %v2497_v25, %v2494_v6  ;;  %v5280_v44 = vld [vmem:[%s6532_s27 + $0xc0] sm:$0xf]  ;;  %v6439_v11 = vld [vmem:[%s6532_s27 + $0xb8] sm:$0xf] }
 0x122   : > { %6038 = vmatprep.mubr.msk.bf16.mxu0 %vm321_vm1, %v5568_v36  ;;  %v4555_v13 = vsel %vm6716_vm7, %v4553_v19, %v4554_v41  ;;  %v2516_v52 = vshrl.u32 %v5277_v54, 16  ;;  %v2519_v17 = vshll.u32 %v5277_v54, 16  ;;  %v2480_v63 = vsel %vm6589_vm4, %v2475_v32, %v7947_v5 }
 0x123   : > { %v2508_v30 = vor.u32 %v2507_v33, %v7970_v12  ;;  %v7997_v3 = vsel %vm6716_vm7, %v4560_v20, %v4561_v59  ;;  %v2525_v36 = vshll.u32 %v6439_v11, 16  ;;  %v5570_v31 = vcombine.low %v4552_v28, %v4555_v13  ;;  %v5541_v20 = vld [vmem:[%s6532_s27 + $0xc0] sm:$0xe] }
 0x124   : > { %v5571_v43 = vcombine.low %v7984_v49, %v7997_v3  ;;  %v2518_v22 = vrot.slane %v2516_v52, 4  ;;  %v2521_v48 = vrot.slane %v2519_v17, 5  ;;  %v2529_v4 = vshrl.u32 %v6439_v11, 16  ;;  %v5542_v52 = vld [vmem:[%s6532_s27 + $0xcc] sm:$0xe] }
 0x125   : > { %v2527_v5 = vrot.slane %v2525_v36, 5  ;;  %v2535_v60 = vshll.u32 %v6440_v10, 16  ;;  %v2540_v37 = vshrl.u32 %v5280_v44, 16  ;;  %v2543_v51 = vshll.u32 %v5280_v44, 16 }
 0x126   : > { %5903 = vmatmul.mubr.msk.bf16.vlgmr.msra.gmra.mrb[16].mxu1 %vm321_vm1, %v7880_v35  ;;  %v2522_v45 = vor.u32 %v2521_v48, %v2518_v22  ;;  %v2549_v61 = vshll.u32 %v6441_v2, 16  ;;  %v2553_v1 = vshrl.u32 %v6441_v2, 16  ;;  %v2490_v0 = vsel %vm6589_vm4, %v2485_v53, %v2489_v38  ;;  %v6442_v53 = vld [vmem:[%s6532_s27 + $0xc8] sm:$0x1] }
 0x127   : > { %5906 = vmatprep.mubr.msk.bf16.mxu1 %vm321_vm1, %v5294_v62  ;;  %v2499_v8 = vrot.slane %v2498_v39, 4  ;;  %v2509_v26 = vrot.slane %v2508_v30, 4  ;;  %v2531_v35 = vrot.slane %v2529_v4, 4  ;;  %v2542_v6 = vrot.slane %v2540_v37, 4 }
 0x128   : > { %v2523_v9 = vrot.slane %v2522_v45, 4  ;;  %v2545_v15 = vrot.slane %v2543_v51, 5  ;;  %v2551_v25 = vrot.slane %v2549_v61, 5  ;;  %v2555_v18 = vrot.slane %v2553_v1, 4 }
 0x129   : > { %6039 = vmatmul.mubr.msk.bf16.gmra.mrb[16].mxu0 %vm321_vm1, %v5569_v34  ;;  %v2532_v62 = vor.u32 %v2531_v35, %v2527_v5  ;;  %v5555_v41 = vrot.slane %v5539_v46, 9  ;;  %v4565_v40 = vrot.slane %v7661_v27, 5  ;;  %v5296_v32 = vcombine.low %v2480_v63, %v2490_v0  ;;  %v5540_v34 = vld [vmem:[%s6532_s27 + $0xb4] sm:$0xe] }
 0x12a   : > { %6042 = vmatprep.mubr.msk.bf16.mxu0 %vm321_vm1, %v5570_v31  ;;  %v2537_v33 = vrot.slane %v2535_v60, 5  ;;  %v4568_v23 = vrot.slane %v7666_v58, 5  ;;  %v2559_v38 = vshll.u32 %v6442_v53, 16  ;;  %v2504_v19 = vsel %vm6589_vm4, %v2499_v8, %v7970_v12 }
 0x12b   : > { %v2533_v54 = vrot.slane %v2532_v62, 4  ;;  %v4566_v7 = vsel %vm6716_vm7, %v5555_v41, %v4565_v40  ;;  %v4567_v57 = vrot.slane %v4565_v40, 4  ;;  %v2514_v27 = vsel %vm6589_vm4, %v2509_v26, %v7974_v56 }
 0x12c   : > { %v2528_v58 = vsel %vm6589_vm4, %v2523_v9, %v2527_v5  ;;  %v4572_v28 = vrot.slane %v7678_v16, 5  ;;  %v2546_v59 = vor.u32 %v2545_v15, %v2542_v6  ;;  %v2556_v39 = vor.u32 %v2555_v18, %v2551_v25 }
 0x12d   : > { %v4569_v13 = vsel %vm6716_vm7, %v4567_v57, %v4568_v23  ;;  %v4579_v12 = vrot.slane %v7696_v24, 5  ;;  %v2538_v56 = vsel %vm6589_vm4, %v2533_v54, %v2537_v33  ;;  %v5556_v44 = vrot.slane %v5540_v34, 9 }
 0x12e   : > { %5907 = vmatmul.mubr.msk.bf16.gmra.mrb[20].mxu1 %vm321_vm1, %v7965_v55  ;;  %v5572_v17 = vcombine.low %v4566_v7, %v4569_v13  ;;  %v4575_v16 = vrot.slane %v7683_v50, 5  ;;  %v5297_v63 = vcombine.low %v2504_v19, %v2514_v27  ;;  %v2561_v30 = vrot.slane %v2559_v38, 5 }
 0x12f   : > { %5910 = vmatprep.mubr.msk.bf16.mxu1 %vm321_vm1, %v5296_v32  ;;  %v4574_v55 = vrot.slane %v4572_v28, 4  ;;  %v5557_v11 = vrot.slane %v5541_v20, 9  ;;  %v4581_v36 = vrot.slane %v4579_v12, 4  ;;  %v4582_v31 = vrot.slane %v7699_v21, 5  ;;  %v8082_v32 = vld [vmem:[%s8201_s2] ss:$0 sm:$0xff] }
 0x130   : > { %v5558_v22 = vrot.slane %v5542_v52, 9  ;;  %v4586_v24 = vrot.slane %v7712_v14, 5  ;;  %v5298_v48 = vcombine.low %v2528_v58, %v2538_v56  ;;  %v2547_v5 = vrot.slane %v2546_v59, 4 }
 0x131   : > { %6043 = vmatmul.mubr.msk.bf16.gmra.mrb[20].mxu0 %vm321_vm1, %v5571_v43  ;;  %v2557_v4 = vrot.slane %v2556_v39, 4  ;;  %v4589_v50 = vrot.slane %v7715_v29, 5  ;;  %v4573_v10 = vsel %vm6716_vm7, %v5556_v44, %v4572_v28  ;;  %v4576_v21 = vsel %vm6716_vm7, %v4574_v55, %v4575_v16 }
 0x132   : > { %6046 = vmatprep.mubr.msk.bf16.mxu0 %vm321_vm1, %v5572_v17  ;;  %v4587_v14 = vsel %vm6716_vm7, %v5558_v22, %v4586_v24  ;;  %v4588_v60 = vrot.slane %v4586_v24, 4  ;;  %v4580_v49 = vsel %vm6716_vm7, %v5557_v11, %v4579_v12  ;;  %v4583_v3 = vsel %vm6716_vm7, %v4581_v36, %v4582_v31 }
 0x133   : > { %v5573_v43 = vcombine.low %v4573_v10, %v4576_v21  ;;  %v2552_v45 = vsel %vm6589_vm4, %v2547_v5, %v2551_v25  ;;  %v2562_v51 = vsel %vm6589_vm4, %v2557_v4, %v2561_v30  ;;  %v5574_v2 = vcombine.low %v4580_v49, %v4583_v3 }
 0x134   : > { %v4590_v29 = vsel %vm6716_vm7, %v4588_v60, %v4589_v50  ;;  %v5299_v61 = vcombine.low %v2552_v45, %v2562_v51 }
 0x135   : > { %v5575_v37 = vcombine.low %v4587_v14, %v4590_v29 }
 0x136   : > { %5911 = vmatmul.mubr.msk.bf16.gmra.mrb[24].mxu1 %vm321_vm1, %v5297_v63 }
 0x137   : > { %5914 = vmatprep.mubr.msk.bf16.mxu1 %vm321_vm1, %v5298_v48 }
 0x139   : > { %6047 = vmatmul.mubr.msk.bf16.gmra.mrb[24].mxu0 %vm321_vm1, %v5573_v43 }
 0x13a   : > { %6050 = vmatprep.mubr.msk.bf16.mxu0 %vm321_vm1, %v5574_v2 }
 0x13e   : > { %5915 = vmatmul.mubr.msk.bf16.gmra.mrb[28].mxu1 %vm321_vm1, %v5299_v61 }
 0x141   : > { %6051 = vmatmul.mubr.msk.bf16.gmra.mrb[28].mxu0 %vm321_vm1, %v5575_v37 }
 0x1b9   : > { %v5854_v47 = vpop.f32.mrb[0].mxu1 }
 0x1ba   : > { %v1972_v1 = vpop.f32.mrb[1].mxu1  ;;  %v6056_v33 = vadd.f32 %v5854_v47, %v8082_v32 }
 0x1bb   : > { %v5855_v46 = vpop.f32.mrb[2].mxu1  ;;  %v6058_v23 = vadd.f32 %v8082_v32, %v1972_v1 }
 0x1bc   : > { %v1975_v0 = vpop.f32.mrb[3].mxu1  ;;  %v6060_v53 = vadd.f32 %v5855_v46, %v8082_v32 }
 0x1bd   : > { %v6062_v57 = vadd.f32 %v8082_v32, %v1975_v0 }
 0x1c1   : > { %v5858_v8 = vpop.f32.mrb[4].mxu1 }
 0x1c2   : > { %v1988_v26 = vpop.f32.mrb[5].mxu1  ;;  %v6064_v12 = vadd.f32 %v5858_v8, %v8082_v32 }
 0x1c3   : > { %v5859_v35 = vpop.f32.mrb[6].mxu1  ;;  %v6066_v52 = vadd.f32 %v8082_v32, %v1988_v26 }
 0x1c4   : > { %v1991_v42 = vpop.f32.mrb[7].mxu1  ;;  %v6068_v17 = vadd.f32 %v5859_v35, %v8082_v32 }
 0x1c5   : > { %v6070_v63 = vadd.f32 %v8082_v32, %v1991_v42 }
 0x1c9   : > { %v5862_v9 = vpop.f32.mrb[8].mxu1 }
 0x1ca   : > { %v2004_v6 = vpop.f32.mrb[9].mxu1  ;;  %v6072_v4 = vadd.f32 %v5862_v9, %v8082_v32 }
 0x1cb   : > { %v5863_v15 = vpop.f32.mrb[10].mxu1  ;;  %v6074_v50 = vadd.f32 %v8082_v32, %v2004_v6 }
 0x1cc   : > { %v2007_v25 = vpop.f32.mrb[11].mxu1  ;;  %v6076_v21 = vadd.f32 %v5863_v15, %v8082_v32 }
 0x1cd   : > { %v6078_v49 = vadd.f32 %v8082_v32, %v2007_v25 }
 0x1d1   : > { %v8071_v62 = vpop.f32.mrb[12].mxu1 }
 0x1d2   : > { %v8073_v18 = vpop.f32.mrb[13].mxu1  ;;  %v6080_v1 = vadd.f32 %v8071_v62, %v8082_v32 }
 0x1d3   : > { %v8075_v41 = vpop.f32.mrb[14].mxu1  ;;  %v6082_v46 = vadd.f32 %v8082_v32, %v8073_v18 }
 0x1d4   : > { %v8077_v40 = vpop.f32.mrb[15].mxu1  ;;  %v6084_v8 = vadd.f32 %v8075_v41, %v8082_v32 }
 0x1d5   : > { %v6086_v42 = vadd.f32 %v8082_v32, %v8077_v40 }
 0x1dc   : > { %v6024_v54 = vpop.f32.mrb[0].mxu0 }
 0x1dd   : > { %v6057_v38 = vadd.f32 %v6056_v33, %v6024_v54  ;;  %v4726_v7 = vpop.f32.mrb[1].mxu0 }
 0x1de   : > { %v6059_v34 = vadd.f32 %v6058_v23, %v4726_v7  ;;  %v6025_v19 = vpop.f32.mrb[2].mxu0 }
 0x1df   : > { %v4887_v27 = vmax.f32 %v6057_v38, 0.0  ;;  %v6061_v58 = vadd.f32 %v6060_v53, %v6025_v19  ;;  %v4729_v28 = vpop.f32.mrb[3].mxu0 }
 0x1e0   : > { %v4885_v20 = vmax.f32 %v6059_v34, 0.0  ;;  %v6063_v59 = vadd.f32 %v6062_v57, %v4729_v28 }
 0x1e1   : > { %4920 = vst.msk [vmem:[%s8092_s22 + $0x10] sm:$0xff] %vm4917_vm8, %v4887_v27  ;;  %v4888_v39 = vmax.f32 %v6061_v58, 0.0 }
 0x1e2   : > { %4918 = vst.msk [vmem:[%s8092_s22] sm:$0xff] %vm4917_vm8, %v4885_v20  ;;  %v4886_v13 = vmax.f32 %v6063_v59, 0.0 }
 0x1e3   : > { %4921 = vst.msk [vmem:[%s8092_s22 + $0x18] sm:$0xff] %vm4917_vm8, %v4888_v39 }
 0x1e4   : > { %4919 = vst.msk [vmem:[%s8092_s22 + $0x8] sm:$0xff] %vm4917_vm8, %v4886_v13  ;;  %v6028_v56 = vpop.f32.mrb[4].mxu0 }
 0x1e5   : > { %v6065_v44 = vadd.f32 %v6064_v12, %v6028_v56  ;;  %v4742_v16 = vpop.f32.mrb[5].mxu0 }
 0x1e6   : > { %v6067_v30 = vadd.f32 %v6066_v52, %v4742_v16  ;;  %v6029_v55 = vpop.f32.mrb[6].mxu0 }
 0x1e7   : > { %v4891_v11 = vmax.f32 %v6065_v44, 0.0  ;;  %v6069_v36 = vadd.f32 %v6068_v17, %v6029_v55  ;;  %v4745_v31 = vpop.f32.mrb[7].mxu0 }
 0x1e8   : > { %v4889_v22 = vmax.f32 %v6067_v30, 0.0  ;;  %v6071_v24 = vadd.f32 %v6070_v63, %v4745_v31 }
 0x1e9   : > { %4924 = vst.msk [vmem:[%s8092_s22 + $0x30] sm:$0xff] %vm4917_vm8, %v4891_v11  ;;  %v4892_v48 = vmax.f32 %v6069_v36, 0.0 }
 0x1ea   : > { %4922 = vst.msk [vmem:[%s8092_s22 + $0x20] sm:$0xff] %vm4917_vm8, %v4889_v22  ;;  %v4890_v5 = vmax.f32 %v6071_v24, 0.0 }
 0x1eb   : > { %4925 = vst.msk [vmem:[%s8092_s22 + $0x38] sm:$0xff] %vm4917_vm8, %v4892_v48 }
 0x1ec   : > { %4923 = vst.msk [vmem:[%s8092_s22 + $0x28] sm:$0xff] %vm4917_vm8, %v4890_v5  ;;  %v6032_v10 = vpop.f32.mrb[8].mxu0 }
 0x1ed   : > { %v6073_v14 = vadd.f32 %v6072_v4, %v6032_v10  ;;  %v4758_v60 = vpop.f32.mrb[9].mxu0 }
 0x1ee   : > { %v6075_v3 = vadd.f32 %v6074_v50, %v4758_v60  ;;  %v6033_v29 = vpop.f32.mrb[10].mxu0 }
 0x1ef   : > { %v4895_v43 = vmax.f32 %v6073_v14, 0.0  ;;  %v6077_v37 = vadd.f32 %v6076_v21, %v6033_v29  ;;  %v4761_v45 = vpop.f32.mrb[11].mxu0 }
 0x1f0   : > { %v4893_v51 = vmax.f32 %v6075_v3, 0.0  ;;  %v6079_v2 = vadd.f32 %v6078_v49, %v4761_v45 }
 0x1f1   : > { %4928 = vst.msk [vmem:[%s8092_s22 + $0x50] sm:$0xff] %vm4917_vm8, %v4895_v43  ;;  %v4896_v61 = vmax.f32 %v6077_v37, 0.0 }
 0x1f2   : > { %4926 = vst.msk [vmem:[%s8092_s22 + $0x40] sm:$0xff] %vm4917_vm8, %v4893_v51  ;;  %v4894_v47 = vmax.f32 %v6079_v2, 0.0 }
 0x1f3   : > { %4929 = vst.msk [vmem:[%s8092_s22 + $0x58] sm:$0xff] %vm4917_vm8, %v4896_v61 }
 0x1f4   : > { %4927 = vst.msk [vmem:[%s8092_s22 + $0x48] sm:$0xff] %vm4917_vm8, %v4894_v47  ;;  %v6036_v0 = vpop.f32.mrb[12].mxu0 }
 0x1f5   : > { %v6081_v26 = vadd.f32 %v6080_v1, %v6036_v0  ;;  %v4774_v35 = vpop.f32.mrb[13].mxu0 }
 0x1f6   : > { %v6083_v9 = vadd.f32 %v6082_v46, %v4774_v35  ;;  %v6037_v6 = vpop.f32.mrb[14].mxu0 }
 0x1f7   : > { %v4899_v15 = vmax.f32 %v6081_v26, 0.0  ;;  %v6085_v25 = vadd.f32 %v6084_v8, %v6037_v6  ;;  %v4777_v62 = vpop.f32.mrb[15].mxu0 }
 0x1f8   : > { %v4897_v33 = vmax.f32 %v6083_v9, 0.0  ;;  %v6087_v23 = vadd.f32 %v6086_v42, %v4777_v62 }
 0x1f9   : > { %v5904_v18 = vpop.f32.mrb[16].mxu1  ;;  %4932 = vst.msk [vmem:[%s8092_s22 + $0x70] sm:$0xff] %vm4917_vm8, %v4899_v15  ;;  %v4900_v41 = vmax.f32 %v6085_v25, 0.0 }
 0x1fa   : > { %v2762_v54 = vpop.f32.mrb[17].mxu1  ;;  %4930 = vst.msk [vmem:[%s8092_s22 + $0x60] sm:$0xff] %vm4917_vm8, %v4897_v33  ;;  %v4898_v38 = vmax.f32 %v6087_v23, 0.0  ;;  %v6088_v40 = vadd.f32 %v5904_v18, %v8082_v32 }
 0x1fb   : > { %v5905_v53 = vpop.f32.mrb[18].mxu1  ;;  %4933 = vst.msk [vmem:[%s8092_s22 + $0x78] sm:$0xff] %vm4917_vm8, %v4900_v41  ;;  %v6090_v57 = vadd.f32 %v8082_v32, %v2762_v54 }
 0x1fc   : > { %v2765_v7 = vpop.f32.mrb[19].mxu1  ;;  %4931 = vst.msk [vmem:[%s8092_s22 + $0x68] sm:$0xff] %vm4917_vm8, %v4898_v38  ;;  %v6040_v34 = vpop.f32.mrb[16].mxu0  ;;  %v6092_v19 = vadd.f32 %v5905_v53, %v8082_v32 }
 0x1fd   : > { %v6089_v27 = vadd.f32 %v6088_v40, %v6040_v34  ;;  %v4790_v58 = vpop.f32.mrb[17].mxu0  ;;  %v6094_v28 = vadd.f32 %v8082_v32, %v2765_v7 }
 0x1fe   : > { %v6091_v20 = vadd.f32 %v6090_v57, %v4790_v58  ;;  %v6041_v59 = vpop.f32.mrb[18].mxu0 }
 0x1ff   : > { %v4903_v39 = vmax.f32 %v6089_v27, 0.0  ;;  %v6093_v13 = vadd.f32 %v6092_v19, %v6041_v59  ;;  %v4793_v12 = vpop.f32.mrb[19].mxu0 }
 0x200   : > { %v4901_v56 = vmax.f32 %v6091_v20, 0.0  ;;  %v6095_v17 = vadd.f32 %v6094_v28, %v4793_v12 }
 0x201   : > { %v5908_v52 = vpop.f32.mrb[20].mxu1  ;;  %4936 = vst.msk [vmem:[%s8092_s22 + $0x90] sm:$0xff] %vm4917_vm8, %v4903_v39  ;;  %v4904_v16 = vmax.f32 %v6093_v13, 0.0 }
 0x202   : > { %v2778_v44 = vpop.f32.mrb[21].mxu1  ;;  %4934 = vst.msk [vmem:[%s8092_s22 + $0x80] sm:$0xff] %vm4917_vm8, %v4901_v56  ;;  %v4902_v30 = vmax.f32 %v6095_v17, 0.0  ;;  %v6096_v55 = vadd.f32 %v5908_v52, %v8082_v32 }
 0x203   : > { %v5909_v63 = vpop.f32.mrb[22].mxu1  ;;  %4937 = vst.msk [vmem:[%s8092_s22 + $0x98] sm:$0xff] %vm4917_vm8, %v4904_v16  ;;  %v6098_v36 = vadd.f32 %v8082_v32, %v2778_v44 }
 0x204   : > { %v2781_v11 = vpop.f32.mrb[23].mxu1  ;;  %4935 = vst.msk [vmem:[%s8092_s22 + $0x88] sm:$0xff] %vm4917_vm8, %v4902_v30  ;;  %v6044_v31 = vpop.f32.mrb[20].mxu0  ;;  %v6100_v22 = vadd.f32 %v5909_v63, %v8082_v32 }
 0x205   : > { %v6097_v24 = vadd.f32 %v6096_v55, %v6044_v31  ;;  %v4806_v48 = vpop.f32.mrb[21].mxu0  ;;  %v6102_v5 = vadd.f32 %v8082_v32, %v2781_v11 }
 0x206   : > { %v6099_v4 = vadd.f32 %v6098_v36, %v4806_v48  ;;  %v6045_v50 = vpop.f32.mrb[22].mxu0 }
 0x207   : > { %v4907_v10 = vmax.f32 %v6097_v24, 0.0  ;;  %v6101_v21 = vadd.f32 %v6100_v22, %v6045_v50  ;;  %v4809_v14 = vpop.f32.mrb[23].mxu0 }
 0x208   : > { %v4905_v49 = vmax.f32 %v6099_v4, 0.0  ;;  %v6103_v3 = vadd.f32 %v6102_v5, %v4809_v14 }
 0x209   : > { %v5912_v60 = vpop.f32.mrb[24].mxu1  ;;  %4940 = vst.msk [vmem:[%s8092_s22 + $0xb0] sm:$0xff] %vm4917_vm8, %v4907_v10  ;;  %v4908_v43 = vmax.f32 %v6101_v21, 0.0 }
 0x20a   : > { %v2794_v29 = vpop.f32.mrb[25].mxu1  ;;  %4938 = vst.msk [vmem:[%s8092_s22 + $0xa0] sm:$0xff] %vm4917_vm8, %v4905_v49  ;;  %v4906_v45 = vmax.f32 %v6103_v3, 0.0  ;;  %v6104_v51 = vadd.f32 %v5912_v60, %v8082_v32 }
 0x20b   : > { %v5913_v37 = vpop.f32.mrb[26].mxu1  ;;  %4941 = vst.msk [vmem:[%s8092_s22 + $0xb8] sm:$0xff] %vm4917_vm8, %v4908_v43  ;;  %v6106_v61 = vadd.f32 %v8082_v32, %v2794_v29 }
 0x20c   : > { %v2797_v2 = vpop.f32.mrb[27].mxu1  ;;  %4939 = vst.msk [vmem:[%s8092_s22 + $0xa8] sm:$0xff] %vm4917_vm8, %v4906_v45  ;;  %v6048_v47 = vpop.f32.mrb[24].mxu0  ;;  %v6108_v1 = vadd.f32 %v5913_v37, %v8082_v32 }
 0x20d   : > { %v6105_v46 = vadd.f32 %v6104_v51, %v6048_v47  ;;  %v4822_v0 = vpop.f32.mrb[25].mxu0  ;;  %v6110_v8 = vadd.f32 %v8082_v32, %v2797_v2 }
 0x20e   : > { %v6107_v26 = vadd.f32 %v6106_v61, %v4822_v0  ;;  %v6049_v35 = vpop.f32.mrb[26].mxu0 }
 0x20f   : > { %v4911_v42 = vmax.f32 %v6105_v46, 0.0  ;;  %v6109_v9 = vadd.f32 %v6108_v1, %v6049_v35  ;;  %v4825_v6 = vpop.f32.mrb[27].mxu0 }
 0x210   : > { %v4909_v25 = vmax.f32 %v6107_v26, 0.0  ;;  %v6111_v62 = vadd.f32 %v6110_v8, %v4825_v6 }
 0x211   : > { %v5916_v15 = vpop.f32.mrb[28].mxu1  ;;  %4944 = vst.msk [vmem:[%s8092_s22 + $0xd0] sm:$0xff] %vm4917_vm8, %v4911_v42  ;;  %v4912_v33 = vmax.f32 %v6109_v9, 0.0 }
 0x212   : > { %v2810_v18 = vpop.f32.mrb[29].mxu1  ;;  %4942 = vst.msk [vmem:[%s8092_s22 + $0xc0] sm:$0xff] %vm4917_vm8, %v4909_v25  ;;  %v4910_v54 = vmax.f32 %v6111_v62, 0.0  ;;  %v6112_v41 = vadd.f32 %v5916_v15, %v8082_v32 }
 0x213   : > { %v5917_v23 = vpop.f32.mrb[30].mxu1  ;;  %4945 = vst.msk [vmem:[%s8092_s22 + $0xd8] sm:$0xff] %vm4917_vm8, %v4912_v33  ;;  %v6114_v38 = vadd.f32 %v8082_v32, %v2810_v18 }
 0x214   : > { %v2813_v53 = vpop.f32.mrb[31].mxu1  ;;  %4943 = vst.msk [vmem:[%s8092_s22 + $0xc8] sm:$0xff] %vm4917_vm8, %v4910_v54  ;;  %v6052_v40 = vpop.f32.mrb[28].mxu0  ;;  %v6116_v7 = vadd.f32 %v5917_v23, %v8082_v32 }
 0x215   : > { %v6113_v57 = vadd.f32 %v6112_v41, %v6052_v40  ;;  %v4838_v34 = vpop.f32.mrb[29].mxu0  ;;  %v6118_v19 = vadd.f32 %v8082_v32, %v2813_v53 }
 0x216   : > { %v6115_v27 = vadd.f32 %v6114_v38, %v4838_v34  ;;  %v6053_v58 = vpop.f32.mrb[30].mxu0 }
 0x217   : > { %v4915_v28 = vmax.f32 %v6113_v57, 0.0  ;;  %v6117_v20 = vadd.f32 %v6116_v7, %v6053_v58  ;;  %v4841_v59 = vpop.f32.mrb[31].mxu0 }
 0x218   : > { %v4913_v39 = vmax.f32 %v6115_v27, 0.0  ;;  %v6119_v13 = vadd.f32 %v6118_v19, %v4841_v59 }
 0x219   : > { %4948 = vst.msk [vmem:[%s8092_s22 + $0xf0] sm:$0xff] %vm4917_vm8, %v4915_v28  ;;  %v4916_v12 = vmax.f32 %v6117_v20, 0.0 }
 0x21a   : > { %4946 = vst.msk [vmem:[%s8092_s22 + $0xe0] sm:$0xff] %vm4917_vm8, %v4913_v39  ;;  %v4914_v52 = vmax.f32 %v6119_v13, 0.0 }
 0x21b   : > { %4949 = vst.msk [vmem:[%s8092_s22 + $0xf8] sm:$0xff] %vm4917_vm8, %v4916_v12 }
 0x21c   : > { %4947 = vst.msk [vmem:[%s8092_s22 + $0xe8] sm:$0xff] %vm4917_vm8, %v4914_v52 }
 0x21d PF: > { %s13_s14 = sadd.s32 1, %s6465_s14   ;;  %s8209_s12 = smov %s6461_s13 }
 0x21e   : > { %p10_p5 = scmp.ge.s32.totalorder %s13_s14, 4   ;;  %s8210_s13 = smov %s8212_s15 }
 0x220   :  { %12 = sbr.rel (!%p10_p5) target bundleno = 2 (0x2), region = 73 }

</bundles_post_ra>
